<compile_context>
chip_gen: v7x
topology: tpu7x:2x2x1
jax: 0.10.0
libtpu: 0.0.40
codegen_flags: <defaults>
</compile_context>

<pallas_src>
import math

import jax
import jax.numpy as jnp
from jax import lax
from jax.experimental import pallas as pl
from jax.experimental.pallas import tpu as pltpu

LANE = 128  # pad channels to this many lanes


# ------------------------------- small helpers --------------------------------

def _round_up(v, m):
    return ((v + m - 1) // m) * m


def _chunk_sizes(C, chunks):
    # torch.chunk semantics: chunk size ceil(C/chunks), possibly fewer chunks.
    size = -(-C // chunks)
    sizes, rem = [], C
    while rem > 0:
        s = min(size, rem)
        sizes.append(s)
        rem -= s
    return sizes


def _build_shift_masks(C, Cp, shift_size):
    """mask[k, c] = 1 if real channel c belongs to chunk k (chunk k gets shift k-pad)."""
    sizes = _chunk_sizes(C, shift_size)
    rows, start = [], 0
    for k in range(shift_size):
        row = [0.0] * Cp
        if k < len(sizes):
            row[start:start + sizes[k]] = [1.0] * sizes[k]
            start += sizes[k]
        rows.append(row)
    return jnp.array(rows, dtype=jnp.float32)        # (shift_size, Cp)


def _shift_zero(x, s, axis):
    """out[..., i, ...] = x[..., i-s, ...] along `axis`, zero-filled out of range."""
    if s == 0:
        return x
    n = x.shape[axis]
    if abs(s) >= n:
        return jnp.zeros_like(x)
    zshape = list(x.shape)
    zshape[axis] = abs(s)
    zeros = jnp.zeros(zshape, x.dtype)
    if s > 0:
        kept = lax.slice_in_dim(x, 0, n - s, axis=axis)
        return jnp.concatenate([zeros, kept], axis=axis)
    kept = lax.slice_in_dim(x, -s, n, axis=axis)
    return jnp.concatenate([kept, zeros], axis=axis)


# ------------------------------- fused kernel ----------------------------------

def _make_fused_kernel(shift_size):
    pad = shift_size // 2

    def kernel(x_ref, smask_ref, w1_ref, b1_ref, wdw_ref, bdw_ref,
               w2_ref, b2_ref, o_ref):
        H, W, Cp = o_ref.shape
        f32 = jnp.float32
        x = x_ref[...].astype(f32)                                  # (H, W, Cp)

        # ---- stage A: per-channel-chunk zero-filled shift along H, then fc1 ----
        xsh = jnp.zeros((H, W, Cp), f32)
        for k in range(shift_size):
            s = k - pad
            m = smask_ref[k:k + 1, :].astype(f32).reshape(1, 1, Cp)
            xsh = xsh + _shift_zero(x, s, axis=0) * m

        hidden = jnp.dot(xsh.reshape(H * W, Cp), w1_ref[...].astype(f32),
                         preferred_element_type=f32) + b1_ref[...].astype(f32)
        hidden = hidden.reshape(H, W, Cp)

        # ---- depthwise 3x3 conv, zero padding handled in-register (no HBM pad) ----
        acc = jnp.zeros((H, W, Cp), f32)
        for kh in range(3):
            row_tap = _shift_zero(hidden, 1 - kh, axis=0)           # cheap: leading dim
            for kw in range(3):
                # column taps shift the sublane axis; pltpu.roll (XLU) would avoid
                # the relayout copies for very large W.
                tap = _shift_zero(row_tap, 1 - kw, axis=1)
                wk = wdw_ref[kh * 3 + kw: kh * 3 + kw + 1, :].astype(f32)
                acc = acc + tap * wk.reshape(1, 1, Cp)
        acc = acc + bdw_ref[...].astype(f32).reshape(1, 1, Cp)

        # ---- Mish with a single exp: tanh(softplus(x)) = ((1+e^x)^2-1)/((1+e^x)^2+1)
        e = jnp.exp(jnp.minimum(acc, 20.0))                         # clamp: exact for x<=20
        t = (1.0 + e) * (1.0 + e)
        act = acc * (t - 1.0) * pl.reciprocal(t + 1.0, approx=True)

        # ---- stage C: per-channel-chunk zero-filled shift along W, then fc2 ----
        ash = jnp.zeros((H, W, Cp), f32)
        for k in range(shift_size):
            s = k - pad
            m = smask_ref[k:k + 1, :].astype(f32).reshape(1, 1, Cp)
            ash = ash + _shift_zero(act, s, axis=1) * m

        out = jnp.dot(ash.reshape(H * W, Cp), w2_ref[...].astype(f32),
                      preferred_element_type=f32) + b2_ref[...].astype(f32)
        o_ref[...] = out.reshape(H, W, Cp).astype(o_ref.dtype)

    return kernel


def shiftmlp_forward(x, params, H, W, shift_size=5):
    """x: (B, N, C) with N == H*W.  Returns (B, N, C)."""
    B, N, C = x.shape
    assert N == H * W
    Cp = _round_up(C, LANE)

    # Zero-pad channels to lane/MXU width; padded lanes stay exactly 0 throughout.
    xp = jnp.pad(x, ((0, 0), (0, 0), (0, Cp - C))).reshape(B, H, W, Cp)
    w1p = jnp.pad(params["w1"], ((0, Cp - C), (0, Cp - C)))
    b1p = jnp.pad(params["b1"], (0, Cp - C)).reshape(1, Cp)
    wdwp = jnp.pad(params["wdw"], ((0, 0), (0, Cp - C)))
    bdwp = jnp.pad(params["bdw"], (0, Cp - C)).reshape(1, Cp)
    w2p = jnp.pad(params["w2"], ((0, Cp - C), (0, Cp - C)))
    b2p = jnp.pad(params["b2"], (0, Cp - C)).reshape(1, Cp)
    smask = _build_shift_masks(C, Cp, shift_size)

    kernel = _make_fused_kernel(shift_size)

    # TODO(synk): for very large H*W add a row-strip grid axis (with a 3-row halo
    # recompute) so the pipeline is deeper than B steps and fits v7x's 64 MiB VMEM.
    out = pl.pallas_call(
        kernel,
        out_shape=jax.ShapeDtypeStruct((B, H, W, Cp), x.dtype),
        grid_spec=pltpu.PrefetchScalarGridSpec(
            num_scalar_prefetch=0,
            grid=(B,),
            in_specs=[
                pl.BlockSpec((pl.Squeezed(), H, W, Cp), lambda b: (b, 0, 0, 0)),
                pl.BlockSpec((shift_size, Cp), lambda b: (0, 0)),
                pl.BlockSpec((Cp, Cp), lambda b: (0, 0)),
                pl.BlockSpec((1, Cp), lambda b: (0, 0)),
                pl.BlockSpec((9, Cp), lambda b: (0, 0)),
                pl.BlockSpec((1, Cp), lambda b: (0, 0)),
                pl.BlockSpec((Cp, Cp), lambda b: (0, 0)),
                pl.BlockSpec((1, Cp), lambda b: (0, 0)),
            ],
            out_specs=pl.BlockSpec((pl.Squeezed(), H, W, Cp),
                                   lambda b: (b, 0, 0, 0)),
        ),
        compiler_params=pltpu.CompilerParams(dimension_semantics=("parallel",)),
    )(xp, smask, w1p, b1p, wdwp, bdwp, w2p, b2p)

    return out.reshape(B, N, Cp)[:, :, :C]


# --------------------------- pure-JAX reference --------------------------------
# Mirrors the torch code literally (transpose -> pad -> chunk -> roll -> narrow),
# independent of the in-kernel shift formulation.

def _shift_tokens_ref(x_bnc, H, W, pad, shift_size, spatial_axis):
    B, N, C = x_bnc.shape
    xn = jnp.transpose(x_bnc, (0, 2, 1)).reshape(B, C, H, W)
    xn = jnp.pad(xn, ((0, 0), (0, 0), (pad, pad), (pad, pad)))
    pieces, start = [], 0
    for s, sh in zip(_chunk_sizes(C, shift_size), range(-pad, pad + 1)):
        pieces.append(jnp.roll(xn[:, start:start + s], sh, axis=spatial_axis))
        start += s
    x_cat = jnp.concatenate(pieces, axis=1)
    x_cat = x_cat[:, :, pad:pad + H, pad:pad + W]
    return jnp.transpose(x_cat.reshape(B, C, H * W), (0, 2, 1))


def reference_forward(x, params, H, W, shift_size=5):
    pad = shift_size // 2
    xr = _shift_tokens_ref(x, H, W, pad, shift_size, spatial_axis=2)
    h = xr @ params["w1"] + params["b1"]
    B, N, Ch = h.shape
    hn = h.reshape(B, H, W, Ch)
    rhs = params["wdw"].reshape(3, 3, 1, Ch)
    conv = lax.conv_general_dilated(
        hn, rhs, (1, 1), "SAME",
        dimension_numbers=("NHWC", "HWIO", "NHWC"),
        feature_group_count=Ch) + params["bdw"]
    act = conv * jnp.tanh(jax.nn.softplus(conv))
    tc = _shift_tokens_ref(act.reshape(B, N, Ch), H, W, pad, shift_size,
                           spatial_axis=3)
    return tc @ params["w2"] + params["b2"]


# ----------------------------------- main --------------------------------------

if __name__ == "__main__":
    B, H, W = 2, 8, 8
    N = H * W
    C = 32              # in_features == hidden_features == out_features (see note)
    shift_size = 5

    key = jax.random.PRNGKey(0)
    k1, k2, k3, k4, k5, k6, kx = jax.random.split(key, 7)

    params = {
        # nn.Linear weights ~ trunc_normal(std=0.02); stored (in, out) = W.T
        "w1": 0.02 * jax.random.normal(k1, (C, C), jnp.float32),
        "b1": 0.05 * jax.random.normal(k4, (C,), jnp.float32),
        # depthwise Conv2d(C, C, 3, groups=C): fan_out = 9 -> std = sqrt(2/9)
        # stored as (9, C): entry (kh*3+kw, c) == torch weight[c, 0, kh, kw]
        "wdw": math.sqrt(2.0 / 9.0) * jax.random.normal(k2, (9, C), jnp.float32),
        "bdw": 0.05 * jax.random.normal(k5, (C,), jnp.float32),
        "w2": 0.02 * jax.random.normal(k3, (C, C), jnp.float32),
        "b2": 0.05 * jax.random.normal(k6, (C,), jnp.float32),
    }

    x = jax.random.normal(kx, (B, N, C), jnp.float32)

    out = jax.block_until_ready(shiftmlp_forward(x, params, H, W, shift_size))
    ref = jax.block_until_ready(reference_forward(x, params, H, W, shift_size))

    assert out.shape == (B, N, C), out.shape
    err = float(jnp.max(jnp.abs(out - ref)))
    assert jnp.allclose(out, ref, rtol=2e-4, atol=2e-4), f"max abs err {err}"

    print("KERNEL_OK")
</pallas_src>

<mosaic_0001>
module attributes {stable_mosaic.version = 11 : i64} {
  func.func @kernel(%arg0: i32, %arg1: memref<1x8x8x128xf32, #tpu.memory_space<vmem>>, %arg2: memref<5x128xf32, #tpu.memory_space<vmem>>, %arg3: memref<128x128xf32, #tpu.memory_space<vmem>>, %arg4: memref<1x128xf32, #tpu.memory_space<vmem>>, %arg5: memref<9x128xf32, #tpu.memory_space<vmem>>, %arg6: memref<1x128xf32, #tpu.memory_space<vmem>>, %arg7: memref<128x128xf32, #tpu.memory_space<vmem>>, %arg8: memref<1x128xf32, #tpu.memory_space<vmem>>, %arg9: memref<1x8x8x128xf32, #tpu.memory_space<vmem>>) attributes {dimension_semantics = [#tpu.dimension_semantics<parallel>], iteration_bounds = array<i64: 2>, scalar_prefetch = 0 : i64, scratch_operands = 0 : i64, tpu.core_type = #tpu.core_type<tc>, window_params = [{transform_indices = @transform_0, window_bounds = array<i64: 1, 8, 8, 128>}, {pipeline_mode = #tpu.pipeline_mode<synchronous>, transform_indices = @transform_1, window_bounds = array<i64: 5, 128>}, {pipeline_mode = #tpu.pipeline_mode<synchronous>, transform_indices = @transform_2, window_bounds = array<i64: 128, 128>}, {pipeline_mode = #tpu.pipeline_mode<synchronous>, transform_indices = @transform_3, window_bounds = array<i64: 1, 128>}, {pipeline_mode = #tpu.pipeline_mode<synchronous>, transform_indices = @transform_4, window_bounds = array<i64: 9, 128>}, {pipeline_mode = #tpu.pipeline_mode<synchronous>, transform_indices = @transform_5, window_bounds = array<i64: 1, 128>}, {pipeline_mode = #tpu.pipeline_mode<synchronous>, transform_indices = @transform_6, window_bounds = array<i64: 128, 128>}, {pipeline_mode = #tpu.pipeline_mode<synchronous>, transform_indices = @transform_7, window_bounds = array<i64: 1, 128>}, {transform_indices = @transform_8, window_bounds = array<i64: 1, 8, 8, 128>}]} {
    %c0 = arith.constant 0 : index
    %c0_0 = arith.constant 0 : index
    %c0_1 = arith.constant 0 : index
    %c0_2 = arith.constant 0 : index
    %0 = vector.load %arg1[%c0, %c0_0, %c0_1, %c0_2] : memref<1x8x8x128xf32, #tpu.memory_space<vmem>>, vector<1x8x8x128xf32>
    %1 = vector.shape_cast %0 : vector<1x8x8x128xf32> to vector<8x8x128xf32>
    %cst = arith.constant 0.000000e+00 : f32
    %2 = vector.broadcast %cst : f32 to vector<8x8x128xf32>
    %c0_3 = arith.constant 0 : index
    %c0_4 = arith.constant 0 : index
    %3 = vector.load %arg2[%c0_3, %c0_4] : memref<5x128xf32, #tpu.memory_space<vmem>>, vector<1x128xf32>
    %4 = vector.shape_cast %3 : vector<1x128xf32> to vector<1x1x128xf32>
    %cst_5 = arith.constant 0.000000e+00 : f32
    %5 = vector.broadcast %cst_5 : f32 to vector<2x8x128xf32>
    %6 = vector.extract_strided_slice %1 {offsets = [2, 0, 0], sizes = [6, 8, 128], strides = [1, 1, 1]} : vector<8x8x128xf32> to vector<6x8x128xf32>
    %7 = tpu.concatenate %6, %5 in 0 : vector<6x8x128xf32>, vector<2x8x128xf32> -> vector<8x8x128xf32>
    %8 = vector.broadcast %4 : vector<1x1x128xf32> to vector<8x8x128xf32>
    %9 = arith.mulf %7, %8 : vector<8x8x128xf32>
    %10 = arith.addf %2, %9 : vector<8x8x128xf32>
    %c1 = arith.constant 1 : index
    %c0_6 = arith.constant 0 : index
    %11 = vector.load %arg2[%c1, %c0_6] : memref<5x128xf32, #tpu.memory_space<vmem>>, vector<1x128xf32>
    %12 = vector.shape_cast %11 : vector<1x128xf32> to vector<1x1x128xf32>
    %cst_7 = arith.constant 0.000000e+00 : f32
    %13 = vector.broadcast %cst_7 : f32 to vector<1x8x128xf32>
    %14 = vector.extract_strided_slice %1 {offsets = [1, 0, 0], sizes = [7, 8, 128], strides = [1, 1, 1]} : vector<8x8x128xf32> to vector<7x8x128xf32>
    %15 = tpu.concatenate %14, %13 in 0 : vector<7x8x128xf32>, vector<1x8x128xf32> -> vector<8x8x128xf32>
    %16 = vector.broadcast %12 : vector<1x1x128xf32> to vector<8x8x128xf32>
    %17 = arith.mulf %15, %16 : vector<8x8x128xf32>
    %18 = arith.addf %10, %17 : vector<8x8x128xf32>
    %c2 = arith.constant 2 : index
    %c0_8 = arith.constant 0 : index
    %19 = vector.load %arg2[%c2, %c0_8] : memref<5x128xf32, #tpu.memory_space<vmem>>, vector<1x128xf32>
    %20 = vector.shape_cast %19 : vector<1x128xf32> to vector<1x1x128xf32>
    %21 = vector.broadcast %20 : vector<1x1x128xf32> to vector<8x8x128xf32>
    %22 = arith.mulf %1, %21 : vector<8x8x128xf32>
    %23 = arith.addf %18, %22 : vector<8x8x128xf32>
    %c3 = arith.constant 3 : index
    %c0_9 = arith.constant 0 : index
    %24 = vector.load %arg2[%c3, %c0_9] : memref<5x128xf32, #tpu.memory_space<vmem>>, vector<1x128xf32>
    %25 = vector.shape_cast %24 : vector<1x128xf32> to vector<1x1x128xf32>
    %cst_10 = arith.constant 0.000000e+00 : f32
    %26 = vector.broadcast %cst_10 : f32 to vector<1x8x128xf32>
    %27 = vector.extract_strided_slice %1 {offsets = [0, 0, 0], sizes = [7, 8, 128], strides = [1, 1, 1]} : vector<8x8x128xf32> to vector<7x8x128xf32>
    %28 = tpu.concatenate %26, %27 in 0 : vector<1x8x128xf32>, vector<7x8x128xf32> -> vector<8x8x128xf32>
    %29 = vector.broadcast %25 : vector<1x1x128xf32> to vector<8x8x128xf32>
    %30 = arith.mulf %28, %29 : vector<8x8x128xf32>
    %31 = arith.addf %23, %30 : vector<8x8x128xf32>
    %c4 = arith.constant 4 : index
    %c0_11 = arith.constant 0 : index
    %32 = vector.load %arg2[%c4, %c0_11] : memref<5x128xf32, #tpu.memory_space<vmem>>, vector<1x128xf32>
    %33 = vector.shape_cast %32 : vector<1x128xf32> to vector<1x1x128xf32>
    %cst_12 = arith.constant 0.000000e+00 : f32
    %34 = vector.broadcast %cst_12 : f32 to vector<2x8x128xf32>
    %35 = vector.extract_strided_slice %1 {offsets = [0, 0, 0], sizes = [6, 8, 128], strides = [1, 1, 1]} : vector<8x8x128xf32> to vector<6x8x128xf32>
    %36 = tpu.concatenate %34, %35 in 0 : vector<2x8x128xf32>, vector<6x8x128xf32> -> vector<8x8x128xf32>
    %37 = vector.broadcast %33 : vector<1x1x128xf32> to vector<8x8x128xf32>
    %38 = arith.mulf %36, %37 : vector<8x8x128xf32>
    %39 = arith.addf %31, %38 : vector<8x8x128xf32>
    %40 = vector.shape_cast %39 : vector<8x8x128xf32> to vector<64x128xf32>
    %c0_13 = arith.constant 0 : index
    %c0_14 = arith.constant 0 : index
    %41 = vector.load %arg3[%c0_13, %c0_14] : memref<128x128xf32, #tpu.memory_space<vmem>>, vector<128x128xf32>
    %cst_15 = arith.constant dense<0.000000e+00> : vector<64x128xf32>
    %42 = tpu.matmul %40, %41, %cst_15 {dimension_numbers = #tpu.dot_dimension_numbers<[1], [0], [0], [1], [0, 0, 1, 1], [], []>} : vector<64x128xf32>, vector<128x128xf32>, vector<64x128xf32> -> vector<64x128xf32>
    %c0_16 = arith.constant 0 : index
    %c0_17 = arith.constant 0 : index
    %43 = vector.load %arg4[%c0_16, %c0_17] : memref<1x128xf32, #tpu.memory_space<vmem>>, vector<1x128xf32>
    %44 = vector.broadcast %43 : vector<1x128xf32> to vector<64x128xf32>
    %45 = arith.addf %42, %44 : vector<64x128xf32>
    %46 = vector.shape_cast %45 : vector<64x128xf32> to vector<8x8x128xf32>
    %cst_18 = arith.constant 0.000000e+00 : f32
    %47 = vector.broadcast %cst_18 : f32 to vector<8x8x128xf32>
    %cst_19 = arith.constant 0.000000e+00 : f32
    %48 = vector.broadcast %cst_19 : f32 to vector<1x8x128xf32>
    %49 = vector.extract_strided_slice %46 {offsets = [0, 0, 0], sizes = [7, 8, 128], strides = [1, 1, 1]} : vector<8x8x128xf32> to vector<7x8x128xf32>
    %50 = tpu.concatenate %48, %49 in 0 : vector<1x8x128xf32>, vector<7x8x128xf32> -> vector<8x8x128xf32>
    %cst_20 = arith.constant 0.000000e+00 : f32
    %51 = vector.broadcast %cst_20 : f32 to vector<8x1x128xf32>
    %52 = vector.extract_strided_slice %50 {offsets = [0, 0, 0], sizes = [8, 7, 128], strides = [1, 1, 1]} : vector<8x8x128xf32> to vector<8x7x128xf32>
    %53 = tpu.concatenate %51, %52 in 1 : vector<8x1x128xf32>, vector<8x7x128xf32> -> vector<8x8x128xf32>
    %c0_21 = arith.constant 0 : index
    %c0_22 = arith.constant 0 : index
    %54 = vector.load %arg5[%c0_21, %c0_22] : memref<9x128xf32, #tpu.memory_space<vmem>>, vector<1x128xf32>
    %55 = vector.shape_cast %54 : vector<1x128xf32> to vector<1x1x128xf32>
    %56 = vector.broadcast %55 : vector<1x1x128xf32> to vector<8x8x128xf32>
    %57 = arith.mulf %53, %56 : vector<8x8x128xf32>
    %58 = arith.addf %47, %57 : vector<8x8x128xf32>
    %c1_23 = arith.constant 1 : index
    %c0_24 = arith.constant 0 : index
    %59 = vector.load %arg5[%c1_23, %c0_24] : memref<9x128xf32, #tpu.memory_space<vmem>>, vector<1x128xf32>
    %60 = vector.shape_cast %59 : vector<1x128xf32> to vector<1x1x128xf32>
    %61 = vector.broadcast %60 : vector<1x1x128xf32> to vector<8x8x128xf32>
    %62 = arith.mulf %50, %61 : vector<8x8x128xf32>
    %63 = arith.addf %58, %62 : vector<8x8x128xf32>
    %cst_25 = arith.constant 0.000000e+00 : f32
    %64 = vector.broadcast %cst_25 : f32 to vector<8x1x128xf32>
    %65 = vector.extract_strided_slice %50 {offsets = [0, 1, 0], sizes = [8, 7, 128], strides = [1, 1, 1]} : vector<8x8x128xf32> to vector<8x7x128xf32>
    %66 = tpu.concatenate %65, %64 in 1 : vector<8x7x128xf32>, vector<8x1x128xf32> -> vector<8x8x128xf32>
    %c2_26 = arith.constant 2 : index
    %c0_27 = arith.constant 0 : index
    %67 = vector.load %arg5[%c2_26, %c0_27] : memref<9x128xf32, #tpu.memory_space<vmem>>, vector<1x128xf32>
    %68 = vector.shape_cast %67 : vector<1x128xf32> to vector<1x1x128xf32>
    %69 = vector.broadcast %68 : vector<1x1x128xf32> to vector<8x8x128xf32>
    %70 = arith.mulf %66, %69 : vector<8x8x128xf32>
    %71 = arith.addf %63, %70 : vector<8x8x128xf32>
    %cst_28 = arith.constant 0.000000e+00 : f32
    %72 = vector.broadcast %cst_28 : f32 to vector<8x1x128xf32>
    %73 = vector.extract_strided_slice %46 {offsets = [0, 0, 0], sizes = [8, 7, 128], strides = [1, 1, 1]} : vector<8x8x128xf32> to vector<8x7x128xf32>
    %74 = tpu.concatenate %72, %73 in 1 : vector<8x1x128xf32>, vector<8x7x128xf32> -> vector<8x8x128xf32>
    %c3_29 = arith.constant 3 : index
    %c0_30 = arith.constant 0 : index
    %75 = vector.load %arg5[%c3_29, %c0_30] : memref<9x128xf32, #tpu.memory_space<vmem>>, vector<1x128xf32>
    %76 = vector.shape_cast %75 : vector<1x128xf32> to vector<1x1x128xf32>
    %77 = vector.broadcast %76 : vector<1x1x128xf32> to vector<8x8x128xf32>
    %78 = arith.mulf %74, %77 : vector<8x8x128xf32>
    %79 = arith.addf %71, %78 : vector<8x8x128xf32>
    %c4_31 = arith.constant 4 : index
    %c0_32 = arith.constant 0 : index
    %80 = vector.load %arg5[%c4_31, %c0_32] : memref<9x128xf32, #tpu.memory_space<vmem>>, vector<1x128xf32>
    %81 = vector.shape_cast %80 : vector<1x128xf32> to vector<1x1x128xf32>
    %82 = vector.broadcast %81 : vector<1x1x128xf32> to vector<8x8x128xf32>
    %83 = arith.mulf %46, %82 : vector<8x8x128xf32>
    %84 = arith.addf %79, %83 : vector<8x8x128xf32>
    %cst_33 = arith.constant 0.000000e+00 : f32
    %85 = vector.broadcast %cst_33 : f32 to vector<8x1x128xf32>
    %86 = vector.extract_strided_slice %46 {offsets = [0, 1, 0], sizes = [8, 7, 128], strides = [1, 1, 1]} : vector<8x8x128xf32> to vector<8x7x128xf32>
    %87 = tpu.concatenate %86, %85 in 1 : vector<8x7x128xf32>, vector<8x1x128xf32> -> vector<8x8x128xf32>
    %c5 = arith.constant 5 : index
    %c0_34 = arith.constant 0 : index
    %88 = vector.load %arg5[%c5, %c0_34] : memref<9x128xf32, #tpu.memory_space<vmem>>, vector<1x128xf32>
    %89 = vector.shape_cast %88 : vector<1x128xf32> to vector<1x1x128xf32>
    %90 = vector.broadcast %89 : vector<1x1x128xf32> to vector<8x8x128xf32>
    %91 = arith.mulf %87, %90 : vector<8x8x128xf32>
    %92 = arith.addf %84, %91 : vector<8x8x128xf32>
    %cst_35 = arith.constant 0.000000e+00 : f32
    %93 = vector.broadcast %cst_35 : f32 to vector<1x8x128xf32>
    %94 = vector.extract_strided_slice %46 {offsets = [1, 0, 0], sizes = [7, 8, 128], strides = [1, 1, 1]} : vector<8x8x128xf32> to vector<7x8x128xf32>
    %95 = tpu.concatenate %94, %93 in 0 : vector<7x8x128xf32>, vector<1x8x128xf32> -> vector<8x8x128xf32>
    %cst_36 = arith.constant 0.000000e+00 : f32
    %96 = vector.broadcast %cst_36 : f32 to vector<8x1x128xf32>
    %97 = vector.extract_strided_slice %95 {offsets = [0, 0, 0], sizes = [8, 7, 128], strides = [1, 1, 1]} : vector<8x8x128xf32> to vector<8x7x128xf32>
    %98 = tpu.concatenate %96, %97 in 1 : vector<8x1x128xf32>, vector<8x7x128xf32> -> vector<8x8x128xf32>
    %c6 = arith.constant 6 : index
    %c0_37 = arith.constant 0 : index
    %99 = vector.load %arg5[%c6, %c0_37] : memref<9x128xf32, #tpu.memory_space<vmem>>, vector<1x128xf32>
    %100 = vector.shape_cast %99 : vector<1x128xf32> to vector<1x1x128xf32>
    %101 = vector.broadcast %100 : vector<1x1x128xf32> to vector<8x8x128xf32>
    %102 = arith.mulf %98, %101 : vector<8x8x128xf32>
    %103 = arith.addf %92, %102 : vector<8x8x128xf32>
    %c7 = arith.constant 7 : index
    %c0_38 = arith.constant 0 : index
    %104 = vector.load %arg5[%c7, %c0_38] : memref<9x128xf32, #tpu.memory_space<vmem>>, vector<1x128xf32>
    %105 = vector.shape_cast %104 : vector<1x128xf32> to vector<1x1x128xf32>
    %106 = vector.broadcast %105 : vector<1x1x128xf32> to vector<8x8x128xf32>
    %107 = arith.mulf %95, %106 : vector<8x8x128xf32>
    %108 = arith.addf %103, %107 : vector<8x8x128xf32>
    %cst_39 = arith.constant 0.000000e+00 : f32
    %109 = vector.broadcast %cst_39 : f32 to vector<8x1x128xf32>
    %110 = vector.extract_strided_slice %95 {offsets = [0, 1, 0], sizes = [8, 7, 128], strides = [1, 1, 1]} : vector<8x8x128xf32> to vector<8x7x128xf32>
    %111 = tpu.concatenate %110, %109 in 1 : vector<8x7x128xf32>, vector<8x1x128xf32> -> vector<8x8x128xf32>
    %c8 = arith.constant 8 : index
    %c0_40 = arith.constant 0 : index
    %112 = vector.load %arg5[%c8, %c0_40] : memref<9x128xf32, #tpu.memory_space<vmem>>, vector<1x128xf32>
    %113 = vector.shape_cast %112 : vector<1x128xf32> to vector<1x1x128xf32>
    %114 = vector.broadcast %113 : vector<1x1x128xf32> to vector<8x8x128xf32>
    %115 = arith.mulf %111, %114 : vector<8x8x128xf32>
    %116 = arith.addf %108, %115 : vector<8x8x128xf32>
    %c0_41 = arith.constant 0 : index
    %c0_42 = arith.constant 0 : index
    %117 = vector.load %arg6[%c0_41, %c0_42] : memref<1x128xf32, #tpu.memory_space<vmem>>, vector<1x128xf32>
    %118 = vector.shape_cast %117 : vector<1x128xf32> to vector<1x1x128xf32>
    %119 = vector.broadcast %118 : vector<1x1x128xf32> to vector<8x8x128xf32>
    %120 = arith.addf %116, %119 : vector<8x8x128xf32>
    %cst_43 = arith.constant 2.000000e+01 : f32
    %121 = vector.broadcast %cst_43 : f32 to vector<8x8x128xf32>
    %122 = arith.minimumf %120, %121 : vector<8x8x128xf32>
    %123 = math.exp %122 : vector<8x8x128xf32>
    %cst_44 = arith.constant 1.000000e+00 : f32
    %124 = vector.broadcast %cst_44 : f32 to vector<8x8x128xf32>
    %125 = arith.addf %124, %123 : vector<8x8x128xf32>
    %cst_45 = arith.constant 1.000000e+00 : f32
    %126 = vector.broadcast %cst_45 : f32 to vector<8x8x128xf32>
    %127 = arith.addf %126, %123 : vector<8x8x128xf32>
    %128 = arith.mulf %125, %127 : vector<8x8x128xf32>
    %cst_46 = arith.constant 1.000000e+00 : f32
    %129 = vector.broadcast %cst_46 : f32 to vector<8x8x128xf32>
    %130 = arith.subf %128, %129 : vector<8x8x128xf32>
    %131 = arith.mulf %120, %130 : vector<8x8x128xf32>
    %cst_47 = arith.constant 1.000000e+00 : f32
    %132 = vector.broadcast %cst_47 : f32 to vector<8x8x128xf32>
    %133 = arith.addf %128, %132 : vector<8x8x128xf32>
    %134 = tpu.reciprocal %133 {approx = true} : vector<8x8x128xf32> -> vector<8x8x128xf32>
    %135 = arith.mulf %131, %134 : vector<8x8x128xf32>
    %cst_48 = arith.constant 0.000000e+00 : f32
    %136 = vector.broadcast %cst_48 : f32 to vector<8x8x128xf32>
    %c0_49 = arith.constant 0 : index
    %c0_50 = arith.constant 0 : index
    %137 = vector.load %arg2[%c0_49, %c0_50] : memref<5x128xf32, #tpu.memory_space<vmem>>, vector<1x128xf32>
    %138 = vector.shape_cast %137 : vector<1x128xf32> to vector<1x1x128xf32>
    %cst_51 = arith.constant 0.000000e+00 : f32
    %139 = vector.broadcast %cst_51 : f32 to vector<8x2x128xf32>
    %140 = vector.extract_strided_slice %135 {offsets = [0, 2, 0], sizes = [8, 6, 128], strides = [1, 1, 1]} : vector<8x8x128xf32> to vector<8x6x128xf32>
    %141 = tpu.concatenate %140, %139 in 1 : vector<8x6x128xf32>, vector<8x2x128xf32> -> vector<8x8x128xf32>
    %142 = vector.broadcast %138 : vector<1x1x128xf32> to vector<8x8x128xf32>
    %143 = arith.mulf %141, %142 : vector<8x8x128xf32>
    %144 = arith.addf %136, %143 : vector<8x8x128xf32>
    %c1_52 = arith.constant 1 : index
    %c0_53 = arith.constant 0 : index
    %145 = vector.load %arg2[%c1_52, %c0_53] : memref<5x128xf32, #tpu.memory_space<vmem>>, vector<1x128xf32>
    %146 = vector.shape_cast %145 : vector<1x128xf32> to vector<1x1x128xf32>
    %cst_54 = arith.constant 0.000000e+00 : f32
    %147 = vector.broadcast %cst_54 : f32 to vector<8x1x128xf32>
    %148 = vector.extract_strided_slice %135 {offsets = [0, 1, 0], sizes = [8, 7, 128], strides = [1, 1, 1]} : vector<8x8x128xf32> to vector<8x7x128xf32>
    %149 = tpu.concatenate %148, %147 in 1 : vector<8x7x128xf32>, vector<8x1x128xf32> -> vector<8x8x128xf32>
    %150 = vector.broadcast %146 : vector<1x1x128xf32> to vector<8x8x128xf32>
    %151 = arith.mulf %149, %150 : vector<8x8x128xf32>
    %152 = arith.addf %144, %151 : vector<8x8x128xf32>
    %c2_55 = arith.constant 2 : index
    %c0_56 = arith.constant 0 : index
    %153 = vector.load %arg2[%c2_55, %c0_56] : memref<5x128xf32, #tpu.memory_space<vmem>>, vector<1x128xf32>
    %154 = vector.shape_cast %153 : vector<1x128xf32> to vector<1x1x128xf32>
    %155 = vector.broadcast %154 : vector<1x1x128xf32> to vector<8x8x128xf32>
    %156 = arith.mulf %135, %155 : vector<8x8x128xf32>
    %157 = arith.addf %152, %156 : vector<8x8x128xf32>
    %c3_57 = arith.constant 3 : index
    %c0_58 = arith.constant 0 : index
    %158 = vector.load %arg2[%c3_57, %c0_58] : memref<5x128xf32, #tpu.memory_space<vmem>>, vector<1x128xf32>
    %159 = vector.shape_cast %158 : vector<1x128xf32> to vector<1x1x128xf32>
    %cst_59 = arith.constant 0.000000e+00 : f32
    %160 = vector.broadcast %cst_59 : f32 to vector<8x1x128xf32>
    %161 = vector.extract_strided_slice %135 {offsets = [0, 0, 0], sizes = [8, 7, 128], strides = [1, 1, 1]} : vector<8x8x128xf32> to vector<8x7x128xf32>
    %162 = tpu.concatenate %160, %161 in 1 : vector<8x1x128xf32>, vector<8x7x128xf32> -> vector<8x8x128xf32>
    %163 = vector.broadcast %159 : vector<1x1x128xf32> to vector<8x8x128xf32>
    %164 = arith.mulf %162, %163 : vector<8x8x128xf32>
    %165 = arith.addf %157, %164 : vector<8x8x128xf32>
    %c4_60 = arith.constant 4 : index
    %c0_61 = arith.constant 0 : index
    %166 = vector.load %arg2[%c4_60, %c0_61] : memref<5x128xf32, #tpu.memory_space<vmem>>, vector<1x128xf32>
    %167 = vector.shape_cast %166 : vector<1x128xf32> to vector<1x1x128xf32>
    %cst_62 = arith.constant 0.000000e+00 : f32
    %168 = vector.broadcast %cst_62 : f32 to vector<8x2x128xf32>
    %169 = vector.extract_strided_slice %135 {offsets = [0, 0, 0], sizes = [8, 6, 128], strides = [1, 1, 1]} : vector<8x8x128xf32> to vector<8x6x128xf32>
    %170 = tpu.concatenate %168, %169 in 1 : vector<8x2x128xf32>, vector<8x6x128xf32> -> vector<8x8x128xf32>
    %171 = vector.broadcast %167 : vector<1x1x128xf32> to vector<8x8x128xf32>
    %172 = arith.mulf %170, %171 : vector<8x8x128xf32>
    %173 = arith.addf %165, %172 : vector<8x8x128xf32>
    %174 = vector.shape_cast %173 : vector<8x8x128xf32> to vector<64x128xf32>
    %c0_63 = arith.constant 0 : index
    %c0_64 = arith.constant 0 : index
    %175 = vector.load %arg7[%c0_63, %c0_64] : memref<128x128xf32, #tpu.memory_space<vmem>>, vector<128x128xf32>
    %cst_65 = arith.constant dense<0.000000e+00> : vector<64x128xf32>
    %176 = tpu.matmul %174, %175, %cst_65 {dimension_numbers = #tpu.dot_dimension_numbers<[1], [0], [0], [1], [0, 0, 1, 1], [], []>} : vector<64x128xf32>, vector<128x128xf32>, vector<64x128xf32> -> vector<64x128xf32>
    %c0_66 = arith.constant 0 : index
    %c0_67 = arith.constant 0 : index
    %177 = vector.load %arg8[%c0_66, %c0_67] : memref<1x128xf32, #tpu.memory_space<vmem>>, vector<1x128xf32>
    %178 = vector.broadcast %177 : vector<1x128xf32> to vector<64x128xf32>
    %179 = arith.addf %176, %178 : vector<64x128xf32>
    %180 = vector.shape_cast %179 : vector<64x128xf32> to vector<8x8x128xf32>
    %c0_68 = arith.constant 0 : index
    %c0_69 = arith.constant 0 : index
    %c0_70 = arith.constant 0 : index
    %c0_71 = arith.constant 0 : index
    %181 = vector.load %arg9[%c0_68, %c0_69, %c0_70, %c0_71] : memref<1x8x8x128xf32, #tpu.memory_space<vmem>>, vector<1x8x8x128xf32>
    %182 = vector.shape_cast %181 : vector<1x8x8x128xf32> to vector<8x8x128xf32>
    %183 = vector.shape_cast %180 : vector<8x8x128xf32> to vector<1x8x8x128xf32>
    tpu.vector_store %arg9[%c0_68, %c0_69, %c0_70, %c0_71], %183 {strides = array<i32>} : memref<1x8x8x128xf32, #tpu.memory_space<vmem>>, vector<1x8x8x128xf32>,
    return
  }
  func.func @transform_0(%arg0: i32) -> (i32, i32, i32, i32) {
    %c0_i32 = arith.constant 0 : i32
    %c0_i32_0 = arith.constant 0 : i32
    %c0_i32_1 = arith.constant 0 : i32
    %c0_i32_2 = arith.constant 0 : i32
    return %arg0, %c0_i32, %c0_i32_0, %c0_i32_1 : i32, i32, i32, i32
  }
  func.func @transform_1(%arg0: i32) -> (i32, i32) {
    %c0_i32 = arith.constant 0 : i32
    %c0_i32_0 = arith.constant 0 : i32
    %c0_i32_1 = arith.constant 0 : i32
    return %c0_i32, %c0_i32_0 : i32, i32
  }
  func.func @transform_2(%arg0: i32) -> (i32, i32) {
    %c0_i32 = arith.constant 0 : i32
    %c0_i32_0 = arith.constant 0 : i32
    %c0_i32_1 = arith.constant 0 : i32
    return %c0_i32, %c0_i32_0 : i32, i32
  }
  func.func @transform_3(%arg0: i32) -> (i32, i32) {
    %c0_i32 = arith.constant 0 : i32
    %c0_i32_0 = arith.constant 0 : i32
    %c0_i32_1 = arith.constant 0 : i32
    return %c0_i32, %c0_i32_0 : i32, i32
  }
  func.func @transform_4(%arg0: i32) -> (i32, i32) {
    %c0_i32 = arith.constant 0 : i32
    %c0_i32_0 = arith.constant 0 : i32
    %c0_i32_1 = arith.constant 0 : i32
    return %c0_i32, %c0_i32_0 : i32, i32
  }
  func.func @transform_5(%arg0: i32) -> (i32, i32) {
    %c0_i32 = arith.constant 0 : i32
    %c0_i32_0 = arith.constant 0 : i32
    %c0_i32_1 = arith.constant 0 : i32
    return %c0_i32, %c0_i32_0 : i32, i32
  }
  func.func @transform_6(%arg0: i32) -> (i32, i32) {
    %c0_i32 = arith.constant 0 : i32
    %c0_i32_0 = arith.constant 0 : i32
    %c0_i32_1 = arith.constant 0 : i32
    return %c0_i32, %c0_i32_0 : i32, i32
  }
  func.func @transform_7(%arg0: i32) -> (i32, i32) {
    %c0_i32 = arith.constant 0 : i32
    %c0_i32_0 = arith.constant 0 : i32
    %c0_i32_1 = arith.constant 0 : i32
    return %c0_i32, %c0_i32_0 : i32, i32
  }
  func.func @transform_8(%arg0: i32) -> (i32, i32, i32, i32) {
    %c0_i32 = arith.constant 0 : i32
    %c0_i32_0 = arith.constant 0 : i32
    %c0_i32_1 = arith.constant 0 : i32
    %c0_i32_2 = arith.constant 0 : i32
    return %arg0, %c0_i32, %c0_i32_0, %c0_i32_1 : i32, i32, i32, i32
  }
}

</mosaic_0001>

<bundles_post_ra>
// kernel: tpu_custom_call.1
= control target key start
LH: loop header
LB: loop body
LE: loop exit
PB: predicated region body
PF: predicated region fallthrough
CT: control target
= control target key end

     0   :  { %s2724_s0 = inlined_call_operand.hbm [shape: f32[2,8,8,128], index: 0, kind: input, shape index: {}]   ;;  %s2725_s1 = inlined_call_operand.hbm [shape: f32[5,128], index: 1, kind: input, shape index: {}]   ;;  %s2726_s2 = inlined_call_operand.hbm [shape: f32[128,128], index: 2, kind: input, shape index: {}]   ;;  %s2727_s3 = inlined_call_operand.vmem [shape: f32[1,128], index: 3, kind: input, shape index: {}]   ;;  %s2728_s4 = inlined_call_operand.hbm [shape: f32[9,128], index: 4, kind: input, shape index: {}]   ;;  %s2729_s5 = inlined_call_operand.vmem [shape: f32[1,128], index: 5, kind: input, shape index: {}]   ;;  %s2730_s6 = inlined_call_operand.hbm [shape: f32[128,128], index: 6, kind: input, shape index: {}]   ;;  %s2731_s7 = inlined_call_operand.vmem [shape: f32[1,128], index: 7, kind: input, shape index: {}]   ;;  %s2732_s8 = inlined_call_operand.hbm [shape: f32[2,8,8,128], index: 8, kind: output, shape index: {}]  }
   0x1   :  { %2736 = sst [smem:[#allocation16_spill]] %s2725_s1 }
   0x2   :  { %2737 = sst [smem:[#allocation17_spill]] %s2728_s4 }
   0x3   :  { %13 = vsyncpa [#allocation3], 0 }
   0x4   :  { %15 = vsyncpa [#allocation3 + $0x1], 0 }
   0x5   :  { %16 = vsyncpa [#allocation6], 0 }
   0x6   :  { %17 = vsyncpa [#allocation9], 0 }
   0x7   :  { %18 = vsyncpa [#allocation4], 0 }
   0x8   :  { %20 = vsyncpa [#allocation4 + $0x1], 0  ;;  %s2066_s27 = smov 0   ;;  %s2068_s28 = smov 0  }
   0x9   :  { %s2070_s29 = smov 0   ;;  %s2072_s30 = smov 0  }
   0xa LB: > { %s2087_s9 = sadd.s32 4294967295, %s2008_s30   ;;  %s1414_s10 = sadd.s32 4294967294, %s2008_s30   ;;  %s2008_s30 = sphi %s2072_s30, %s2759_s30   ;;  %s2004_s29 = sphi %s2070_s29, %s2758_s29   ;;  %s2000_s28 = sphi %s2068_s28, %s2757_s28   ;;  %s1996_s27 = sphi %s2066_s27, %s2756_s27  }
   0xb   : > { %p46_p0 = scmp.ne.s32.totalorder %s2000_s28, %s1996_s27  ;;  %p2733_p1 = scmp.eq.s32.totalorder %s2087_s9, 0 }
   0xc   : > { %p223_p3 = scmp.eq.s32.totalorder %s1414_s10, 1  ;;  %p1415_p5 = scmp.ge.s32.totalorder %s2008_s30, 1 }
   0xd   : > { %p2096_p4 = por %p2733_p1, %p46_p0  ;;  %p230_p7 = scmp.lt.s32.totalorder %s2008_s30, 3 }
   0xe   : > { %p2101_p6 = por %p223_p3, %p46_p0  ;;  %s2010_s14 = smov [#allocation5]  }
   0xf   : > { %s2738_s11 = scalar_select %p2096_p4, 1, 0 }
  0x10   : > { %s2739_s12 = scalar_select %p2101_p6, 1, 0 }
  0x11   : > { %p2106_p8 = pnand %p1415_p5, %p230_p7  ;;  %s243_s15 = sshll.u32 %s2010_s14, 4  ;;  %s244_s15 = int_to_ptr.vmem [resolvable:$true] %s243_s15 }
  0x12   : > { %s2011_s17 = smov [#allocation8]   ;;  %s2012_s19 = smov [#allocation7]  }
  0x13   : > { %s2740_s13 = scalar_select %p2106_p8, 1, 0 }
  0x14   : > { %p1683_p10 = pneg %p2106_p8  ;;  %s269_s18 = sshll.u32 %s2011_s17, 4  ;;  %s2119_s18 = int_to_ptr.vmem [resolvable:$true] %s269_s18 }
  0x15   : > { %s2121_s20 = sshll.u32 %s2012_s19, 4  ;;  %s2742_s1 = sld [smem:[#allocation16_spill]]  ;;  %s254_s20 = int_to_ptr.vmem [resolvable:$true] %s2121_s20 }
  0x16   : > { %p2115_p11 = pnand %p1683_p10, %p2733_p1 }
  0x18   : > { %p2131_p13 = pneg %p2115_p11 }
  0x1b   : > { %s1792_s23 = scalar_lea.hbm %s2742_s1, 128 }
  0x1c   : > { %p1793_p12 = scmp.ne.s32.totalorder %s2742_s1, %s1792_s23  ;;  %p1799_p5 = scmp.lt.u32.totalorder %s1792_s23, %s2742_s1 }
  0x1e   : > { %p1795_p0 = pnand %p2131_p13, %p1793_p12 }
  0x20   : > { %p1796_p3 = pneg %p1795_p0 }
  0x22   : > { %p1801_p7 = pnand %p1799_p5, %p1796_p3 }
  0x24   : > { %1804 = shalt.err (!%p1801_p7)
}
  0x25   : > { %s1805_s17 = scalar_lea.vmem %s244_s15, 128  ;;  %p1813_p2 = scmp.lt.s32.totalorder %s244_s15, %s244_s15 }
  0x26   : > { %p1806_p10 = scmp.ne.s32.totalorder %s244_s15, %s1805_s17  ;;  %p1814_p6 = scmp.lt.s32.totalorder %s1805_s17, %s1805_s17 }
  0x28   : > { %p1808_p9 = pnand %p1806_p10, %p2131_p13  ;;  %p1815_p4 = por %p1814_p6, %p1813_p2 }
  0x2a   : > { %p1809_p1 = pneg %p1808_p9 }
  0x2c   : > { %p1816_p8 = pnand %p1815_p4, %p1809_p1 }
  0x2e   : > { %1819 = shalt.err (!%p1816_p8)
}
  0x2f   : > { %1686 = dma.hbm_to_vmem [thread:$0]  (!%p2115_p11), %s2742_s1, 128, %s244_s15, [#allocation6]  }
  0x30   : > { %s2744_s4 = sld [smem:[#allocation17_spill]] }
  0x36   : > { %s1820_s24 = scalar_lea.hbm %s2744_s4, 256 }
  0x37   : > { %p1821_p9 = scmp.ne.s32.totalorder %s2744_s4, %s1820_s24  ;;  %p1827_p1 = scmp.lt.u32.totalorder %s1820_s24, %s2744_s4 }
  0x39   : > { %p1823_p12 = pnand %p1821_p9, %p2131_p13 }
  0x3b   : > { %p1824_p2 = pneg %p1823_p12 }
  0x3d   : > { %p1829_p4 = pnand %p1827_p1, %p1824_p2 }
  0x3f   : > { %1832 = shalt.err (!%p1829_p4)
}
  0x40   : > { %s1833_s15 = scalar_lea.vmem %s2119_s18, 256  ;;  %p1841_p3 = scmp.lt.s32.totalorder %s2119_s18, %s2119_s18 }
  0x41   : > { %p1834_p6 = scmp.ne.s32.totalorder %s2119_s18, %s1833_s15  ;;  %p1842_p5 = scmp.lt.s32.totalorder %s1833_s15, %s1833_s15 }
  0x43   : > { %p1836_p8 = pnand %p1834_p6, %p2131_p13  ;;  %p1843_p7 = por %p1842_p5, %p1841_p3 }
  0x45   : > { %p1837_p0 = pneg %p1836_p8 }
  0x47   : > { %p1844_p10 = pnand %p1843_p7, %p1837_p0 }
  0x49   : > { %1847 = shalt.err (!%p1844_p10)
}
  0x4a   : > { %s2013_s19 = smov 128   ;;  %s2014_s21 = smov 8  }
  0x4b   : > { %1692 = dma.hbm_to_vmem [thread:$0]  (!%p2115_p11), %s2744_s4, 256, %s2119_s18, [#allocation9], %s2013_s19, %s2013_s19, %s2014_s21  }
  0x4c   : > { %s1848_s10 = scalar_lea.hbm %s2726_s2, 2048 }
  0x4d   : > { %p1849_p9 = scmp.ne.s32.totalorder %s2726_s2, %s1848_s10  ;;  %p1855_p1 = scmp.lt.u32.totalorder %s1848_s10, %s2726_s2 }
  0x4f   : > { %p1851_p12 = pnand %p1849_p9, %p2131_p13 }
  0x51   : > { %p1852_p2 = pneg %p1851_p12 }
  0x53   : > { %p1857_p4 = pnand %p1855_p1, %p1852_p2 }
  0x55   : > { %1860 = shalt.err (!%p1857_p4)
}
  0x56   : > { %s1861_s22 = scalar_lea.vmem %s254_s20, 2048  ;;  %p1869_p3 = scmp.lt.s32.totalorder %s254_s20, %s254_s20 }
  0x57   : > { %p1862_p6 = scmp.ne.s32.totalorder %s254_s20, %s1861_s22  ;;  %p1870_p5 = scmp.lt.s32.totalorder %s1861_s22, %s1861_s22 }
  0x59   : > { %p1864_p8 = pnand %p1862_p6, %p2131_p13  ;;  %p1871_p7 = por %p1870_p5, %p1869_p3 }
  0x5b   : > { %p1865_p0 = pneg %p1864_p8 }
  0x5d   : > { %p1872_p10 = pnand %p1871_p7, %p1865_p0 }
  0x5f   : > { %1875 = shalt.err (!%p1872_p10)
}
  0x60   : > { %1689 = dma.hbm_to_vmem [thread:$0]  (!%p2115_p11), %s2726_s2, 2048, %s254_s20, [#allocation6], %s2013_s19, %s2013_s19, %s2014_s21  }
  0x61   : > { %s2015_s23 = smov [#allocation10]   ;;  %s1876_s14 = scalar_lea.hbm %s2730_s6, 2048 }
  0x62   : > { %s285_s24 = sshll.u32 %s2015_s23, 4  ;;  %p1877_p9 = scmp.ne.s32.totalorder %s2730_s6, %s1876_s14  ;;  %s286_s24 = int_to_ptr.vmem [resolvable:$true] %s285_s24 }
  0x63   : > { %p1883_p1 = scmp.lt.u32.totalorder %s1876_s14, %s2730_s6 }
  0x64   : > { %p1879_p12 = pnand %p1877_p9, %p2131_p13 }
  0x66   : > { %p1880_p2 = pneg %p1879_p12 }
  0x68   : > { %p1885_p4 = pnand %p1883_p1, %p1880_p2 }
  0x6a   : > { %1888 = shalt.err (!%p1885_p4)
}
  0x6b   : > { %s1889_s20 = scalar_lea.vmem %s286_s24, 2048  ;;  %p1897_p3 = scmp.lt.s32.totalorder %s286_s24, %s286_s24 }
  0x6c   : > { %p1890_p6 = scmp.ne.s32.totalorder %s286_s24, %s1889_s20  ;;  %p1898_p5 = scmp.lt.s32.totalorder %s1889_s20, %s1889_s20 }
  0x6e   : > { %p1892_p8 = pnand %p1890_p6, %p2131_p13  ;;  %p1899_p7 = por %p1898_p5, %p1897_p3 }
  0x70   : > { %p1893_p0 = pneg %p1892_p8 }
  0x72   : > { %p1900_p10 = pnand %p1899_p7, %p1893_p0 }
  0x74   : > { %1903 = shalt.err (!%p1900_p10)
}
  0x75   : > { %1695 = dma.hbm_to_vmem [thread:$0]  (!%p2115_p11), %s2730_s6, 2048, %s286_s24, [#allocation9], %s2013_s19, %s2013_s19, %s2014_s21  }
  0x76   : > { %s2217_s26 = sadd.s32 1, %s2008_s30   ;;  %s33_s16 = sadd.s32 1, %s2004_s29 }
  0x77   : > { %s30_s18 = ssub.s32 %s2008_s30, %s2217_s26  ;;  %p40_p13 = scmp.ne.s32.totalorder %s2004_s29, %s2000_s28 }
  0x78   : > { %p31_p9 = scmp.eq.s32.totalorder %s30_s18, 0  ;;  %p41_p12 = scmp.eq.s32.totalorder %s2008_s30, 0 }
  0x79   : > { %p2745_p2 = scmp.eq.s32.totalorder %s2087_s9, 1  ;;  %p1708_p4 = scmp.lt.s32.totalorder %s2008_s30, 2 }
  0x7a   : > { %s2233_s25 = scalar_select %p31_p9, %s2004_s29, %s33_s16  }
  0x7b   : > { %p2227_p1 = por %p2745_p2, %p40_p13  ;;  %p42_p6 = por %p41_p12, %p40_p13 }
  0x7c   : > { %s302_s10 = sand.u32 1, %s2004_s29   ;;  %s1461_s24 = sshll.u32 %s2008_s30, 10 }
  0x7d   : > { %s1421_s14 = sshll.u32 %s302_s10, 6  ;;  %s2240_s22 = scalar_lea.hbm %s2724_s0, %s1461_s24 }
  0x7e   : > { %s306_s20 = scalar_lea.vmem [#allocation2], %s1421_s14  ;;  %p2244_p11 = pnand %p1708_p4, %p42_p6 }
  0x7f   : > { %s313_s4 = sshll.u32 %s306_s20, 4  ;;  %s2248_s16 = scalar_lea.sflag [#allocation3], %s302_s10  ;;  %s2242_s4 = int_to_ptr.vmem [resolvable:$true] %s313_s4 }
  0x80   : > { %s1904_s18 = scalar_lea.hbm %s2240_s22, 1024  ;;  %p1906_p0 = pneg %p2244_p11 }
  0x81   : > { %p1905_p8 = scmp.ne.s32.totalorder %s2240_s22, %s1904_s18  ;;  %s1909_s17 = scalar_lea.hbm %s2724_s0, 2048 }
  0x82   : > { %p1910_p7 = scmp.lt.u32.totalorder %s2240_s22, %s2724_s0  ;;  %p1911_p10 = scmp.lt.u32.totalorder %s1909_s17, %s1904_s18 }
  0x83   : > { %p1907_p3 = pnand %p1906_p0, %p1905_p8  ;;  %p1913_p9 = scmp.lt.u32.totalorder %s1904_s18, %s2240_s22 }
  0x84   : > { %p1912_p13 = por %p1911_p10, %p1910_p7 }
  0x85   : > { %p1908_p5 = pneg %p1907_p3 }
  0x86   : > { %p1914_p12 = por %p1913_p9, %p1912_p13 }
  0x88   : > { %p1915_p2 = pnand %p1914_p12, %p1908_p5 }
  0x8a   : > { %1918 = shalt.err (!%p1915_p2)
}
  0x8b   : > { %s1919_s10 = scalar_lea.vmem %s2242_s4, 1024  ;;  %s2016_s14 = smov [#allocation2]  }
  0x8c   : > { %p1920_p4 = scmp.ne.s32.totalorder %s2242_s4, %s1919_s10  ;;  %s1924_s24 = sshll.u32 %s2016_s14, 4  ;;  %s1925_s24 = int_to_ptr.vmem [resolvable:$false] %s1924_s24 }
  0x8d   : > { %s1926_s15 = scalar_lea.vmem %s1925_s24, 2048  ;;  %p1927_p3 = scmp.lt.s32.totalorder %s2242_s4, %s1925_s24 }
  0x8e   : > { %p1922_p6 = pnand %p1920_p4, %p1906_p0  ;;  %p1928_p7 = scmp.lt.s32.totalorder %s1926_s15, %s1919_s10 }
  0x90   : > { %p1923_p8 = pneg %p1922_p6  ;;  %p1929_p10 = por %p1928_p7, %p1927_p3 }
  0x92   : > { %p1930_p13 = pnand %p1929_p10, %p1923_p8 }
  0x94   : > { %1933 = shalt.err (!%p1930_p13)
}
  0x95   : > { %1699 = dma.hbm_to_vmem [thread:$0]  (!%p2244_p11), %s2240_s22, 1024, %s2242_s4, %s2248_s16, %s2013_s19, %s2013_s19, %s2014_s21  }
  0x96   : > { %p2748_p0 = scmp.ne.s32.totalorder %s2740_s13, 0 }
  0x97   : > { %s2282_s18 = sand.u32 (!%p2748_p0), 1, %s2000_s28   ;;  %p2749_p5 = scmp.ne.s32.totalorder (!%p2748_p0), %s2738_s11, 0 }
  0x98   : > { %325 = sbr.rel (%p2748_p0) target bundleno = 768 (0x300), region = 52  ;;  %s1425_s17 = sshll.u32 (!%p2748_p0), %s2282_s18, 6 }
  0x99   : > { %s328_s20 = scalar_lea.sflag (!%p2748_p0), [#allocation3], %s2282_s18  ;;  %s2288_s1 = scalar_lea.vmem (!%p2748_p0), [#allocation2], %s1425_s17 }
  0x9f   : > { %1979 = dma.done.wait (%p2749_p5), %s328_s20, 1024  }
  0xa0   : > { %1981 = vsyncadd (%p2749_p5), %s328_s20, 4294966272  ;;  %p2750_p11 = scmp.eq.s32.totalorder %s2087_s9, 0 }
  0xa2   : > { %1983 = dma.done.wait (%p2750_p11), [#allocation6], 2176   ;;  %p2751_p9 = pmov %p2750_p11 }
  0xa4   : > { %1985 = vsyncadd (%p2751_p9), [#allocation6], 4294965120  ;;  %p2752_p12 = pmov %p2751_p9 }
  0xa5   : > { %p2753_p2 = pmov %p2751_p9 }
  0xa6   : > { %1987 = dma.done.wait (%p2752_p12), [#allocation9], 2304  }
  0xa7   : > { %1989 = vsyncadd (%p2753_p2), [#allocation9], 4294964992  ;;  %v490_v0 = vld [vmem:[#allocation7] sm:$0xff]  ;;  %v491_v1 = vld [vmem:[#allocation7 + $0x8] sm:$0xff]  ;;  %vm642_vm0 = vcmask 1040384   ;;  %vm709_vm1 = vcmask 1046528  }
  0xa8   : > { %v492_v2 = vld [vmem:[#allocation7 + $0x10] sm:$0xff]  ;;  %v1599_v3 = vpack.c.bf16 %v491_v1, %v490_v0  ;;  %v493_v4 = vld [vmem:[#allocation7 + $0x18] sm:$0xff]  ;;  %v494_v6 = vld [vmem:[#allocation7 + $0x20] sm:$0xff]  ;;  %vm991_vm2 = vcmask 1045504   ;;  %vm1128_vm3 = vcmask 1041408   ;;  %s379_s16 = scalar_lea.vmem [#allocation11], %s1425_s17 }
  0xa9   : > { %v1603_v5 = vpack.c.bf16 %v493_v4, %v492_v2  ;;  %v495_v7 = vld [vmem:[#allocation7 + $0x28] sm:$0xff]  ;;  %v496_v8 = vld [vmem:[#allocation7 + $0x30] sm:$0xff]  ;;  %v497_v10 = vld [vmem:[#allocation7 + $0x38] sm:$0xff]  ;;  %s1303_s10 = sshll.u32 %s379_s16, 4  ;;  %s1462_s14 = sshll.u32 %s2087_s9, 10  ;;  %s2675_s10 = int_to_ptr.vmem [resolvable:$true] %s1303_s10 }
  0xaa   : > { %1600 = vmatprep.subr.bf16.mxu0 %v1599_v3  ;;  %v1607_v9 = vpack.c.bf16 %v495_v7, %v494_v6  ;;  %v2303_v11 = vld [vmem:[%s2288_s1] sm:$0xff]  ;;  %v2306_v12 = vld [vmem:[%s2288_s1 + $0x8] sm:$0xff]  ;;  %v2309_v13 = vld [vmem:[%s2288_s1 + $0x10] sm:$0xff]  ;;  %v1611_v22 = vpack.c.bf16 %v497_v10, %v496_v8  ;;  %s2680_s17 = scalar_lea.hbm %s2732_s8, %s1462_s14  ;;  %s1290_s20 = scalar_lea.sflag [#allocation4], %s2282_s18 }
  0xab   : > { %1602 = vmatpush3.bf16.msra.mxu0 %v1599_v3  ;;  %v2311_v14 = vld [vmem:[#allocation5] ss:$0 sm:$0xff]  ;;  %v2313_v15 = vld [vmem:[#allocation5 + $0x1] ss:$0 sm:$0xff]  ;;  %v2319_v18 = vld [vmem:[#allocation5 + $0x2] ss:$0 sm:$0xff] }
  0xac   : > { %1604 = vmatprep.subr.bf16.mxu0 %v1603_v5  ;;  %v393_v16 = vmul.f32 %v2311_v14, %v2309_v13  ;;  %v412_v17 = vmul.f32 %v2313_v15, %v2306_v12  ;;  %v2321_v19 = vld [vmem:[#allocation5 + $0x3] ss:$0 sm:$0xff]  ;;  %v433_v20 = vmul.f32 %v2319_v18, %v2303_v11  ;;  %v2325_v21 = vld [vmem:[#allocation5 + $0x4] ss:$0 sm:$0xff]  ;;  %v498_v25 = vld [vmem:[#allocation7 + $0x40] sm:$0xff]  ;;  %v413_v36 = vmul.f32 %v2313_v15, %v2309_v13  ;;  %s2018_s9 = smov [#allocation11]  }
  0xad   : > { %v454_v24 = vmul.f32 0.0, %v2321_v19  ;;  %v499_v26 = vld [vmem:[#allocation7 + $0x48] sm:$0xff]  ;;  %v2329_v28 = vmul.f32 0.0, %v2325_v21  ;;  %v2332_v29 = vld [vmem:[%s2288_s1 + $0x18] sm:$0xff]  ;;  %v2335_v30 = vld [vmem:[%s2288_s1 + $0x20] sm:$0xff]  ;;  %v434_v46 = vmul.f32 %v2319_v18, %v2306_v12  ;;  %v435_v50 = vmul.f32 %v2319_v18, %v2309_v13  ;;  %s1938_s11 = sshll.u32 %s2018_s9, 4  ;;  %s1939_s11 = int_to_ptr.vmem [resolvable:$false] %s1938_s11 }
  0xae   : > { %v420_v23 = vadd.f32 %v412_v17, %v393_v16  ;;  %v1615_v31 = vpack.c.bf16 %v499_v26, %v498_v25  ;;  %v500_v33 = vld [vmem:[#allocation7 + $0x50] sm:$0xff]  ;;  %v501_v34 = vld [vmem:[#allocation7 + $0x58] sm:$0xff]  ;;  %v394_v35 = vmul.f32 %v2311_v14, %v2332_v29  ;;  %v395_v38 = vmul.f32 %v2311_v14, %v2335_v30  ;;  %v2347_v40 = vld [vmem:[%s2288_s1 + $0x28] sm:$0xff]  ;;  %s1940_s13 = scalar_lea.vmem %s1939_s11, 2048  ;;  %p1941_p3 = scmp.lt.s32.totalorder %s2675_s10, %s1939_s11 }
  0xaf   : > { %1606 = vmatpush3.bf16.msra.mxu0 %v1603_v5  ;;  %v414_v39 = vmul.f32 %v2313_v15, %v2332_v29  ;;  %v1619_v41 = vpack.c.bf16 %v501_v34, %v500_v33  ;;  %v2350_v42 = vld [vmem:[%s2288_s1 + $0x30] sm:$0xff]  ;;  %v502_v43 = vld [vmem:[#allocation7 + $0x60] sm:$0xff]  ;;  %v396_v47 = vmul.f32 %v2311_v14, %v2347_v40  ;;  %v415_v48 = vmul.f32 %v2313_v15, %v2335_v30  ;;  %v387_v53 = vld [vmem:[%s2288_s1 + $0x38] sm:$0xff]  ;;  %s1934_s1 = scalar_lea.vmem %s2675_s10, 1024 }
  0xb0   : > { %1608 = vmatprep.subr.bf16.mxu0 %v1607_v9  ;;  %v441_v27 = vadd.f32 %v433_v20, %v420_v23  ;;  %v503_v44 = vld [vmem:[#allocation7 + $0x68] sm:$0xff]  ;;  %v421_v45 = vadd.f32 %v413_v36, %v394_v35  ;;  %v397_v51 = vmul.f32 %v2311_v14, %v2350_v42  ;;  %v416_v52 = vmul.f32 %v2313_v15, %v2347_v40  ;;  %v504_v55 = vld [vmem:[#allocation7 + $0x70] sm:$0xff]  ;;  %v505_v56 = vld [vmem:[#allocation7 + $0x78] sm:$0xff]  ;;  %p1935_p4 = scmp.ne.s32.totalorder %s2675_s10, %s1934_s1  ;;  %p1942_p7 = scmp.lt.s32.totalorder %s1940_s13, %s1934_s1 }
  0xb1   : > { %v422_v49 = vadd.f32 %v414_v39, %v395_v38  ;;  %v1623_v54 = vpack.c.bf16 %v503_v44, %v502_v43  ;;  %v455_v58 = vmul.f32 %v2321_v19, %v2303_v11  ;;  %v423_v59 = vadd.f32 %v415_v48, %v396_v47 }
  0xb2   : > { %v462_v32 = vadd.f32 %v454_v24, %v441_v27  ;;  %v442_v57 = vadd.f32 %v434_v46, %v421_v45  ;;  %v436_v60 = vmul.f32 %v2319_v18, %v2332_v29  ;;  %v456_v62 = vmul.f32 %v2321_v19, %v2306_v12  ;;  %p1936_p6 = pnand %p1935_p4, %p2227_p1  ;;  %p1943_p10 = por %p1942_p7, %p1941_p3 }
  0xb3   : > { %1610 = vmatpush3.bf16.msra.mxu0 %v1607_v9  ;;  %v443_v61 = vadd.f32 %v435_v50, %v422_v49  ;;  %v398_v63 = vmul.f32 %v2311_v14, %v387_v53  ;;  %v417_v0 = vmul.f32 %v2313_v15, %v2350_v42  ;;  %v424_v1 = vadd.f32 %v416_v52, %v397_v51  ;;  %v1153_v51 = vld [vmem:[#allocation10] sm:$0xff] }
  0xb4   : > { %1612 = vmatprep.subr.bf16.mxu0 %v1611_v22  ;;  %v482_v37 = vadd.f32 %v2329_v28, %v462_v32  ;;  %v437_v2 = vmul.f32 %v2319_v18, %v2335_v30  ;;  %v399_v3 = vmul.f32 0.0, %v2311_v14  ;;  %v418_v4 = vmul.f32 %v2313_v15, %v387_v53  ;;  %p1937_p8 = pneg %p1936_p6 }
  0xb5   : > { %v1627_v5 = vpack.c.bf16 %v505_v56, %v504_v55  ;;  %v463_v6 = vadd.f32 %v455_v58, %v442_v57  ;;  %v476_v7 = vmul.f32 %v2325_v21, %v2303_v11  ;;  %v444_v8 = vadd.f32 %v436_v60, %v423_v59  ;;  %v1157_v55 = vld [vmem:[#allocation10 + $0x20] sm:$0xff]  ;;  %v1158_v56 = vld [vmem:[#allocation10 + $0x28] sm:$0xff]  ;;  %v1160_v58 = vld [vmem:[#allocation10 + $0x38] sm:$0xff] }
  0xb6   : > { %1543 = vmatprep.mubr.f32.mxu0 %v482_v37  ;;  %v457_v9 = vmul.f32 %v2321_v19, %v2309_v13  ;;  %v458_v10 = vmul.f32 %v2321_v19, %v2332_v29  ;;  %v425_v16 = vadd.f32 %v417_v0, %v398_v63  ;;  %v438_v17 = vmul.f32 %v2319_v18, %v2347_v40  ;;  %v1161_v59 = vld [vmem:[#allocation10 + $0x40] sm:$0xff]  ;;  %v1163_v63 = vld [vmem:[#allocation10 + $0x50] sm:$0xff]  ;;  %v1164_v0 = vld [vmem:[#allocation10 + $0x58] sm:$0xff]  ;;  %p1944_p13 = pnand %p1943_p10, %p1937_p8 }
  0xb7   : > { %1614 = vmatpush3.bf16.msra.mxu0 %v1611_v22  ;;  %v419_v20 = vmul.f32 0.0, %v2313_v15  ;;  %v464_v22 = vadd.f32 %v456_v62, %v443_v61  ;;  %v445_v23 = vadd.f32 %v437_v2, %v424_v1  ;;  %v426_v24 = vadd.f32 %v418_v4, %v399_v3  ;;  %v1162_v61 = vld [vmem:[#allocation10 + $0x48] sm:$0xff]  ;;  %v1165_v2 = vld [vmem:[#allocation10 + $0x60] sm:$0xff] }
  0xb8   : > { %1616 = vmatprep.subr.bf16.mxu0 %v1615_v31  ;;  %v439_v11 = vmul.f32 %v2319_v18, %v2350_v42  ;;  %v483_v25 = vadd.f32 %v2329_v28, %v463_v6  ;;  %v465_v26 = vadd.f32 %v457_v9, %v444_v8  ;;  %v477_v27 = vmul.f32 %v2325_v21, %v2306_v12  ;;  %v1168_v6 = vld [vmem:[#allocation10 + $0x78] sm:$0xff] }
  0xb9   : > { %v446_v32 = vadd.f32 %v438_v17, %v425_v16  ;;  %v459_v33 = vmul.f32 %v2321_v19, %v2335_v30  ;;  %v427_v34 = vadd.f32 %v419_v20, %v399_v3  ;;  %v440_v35 = vmul.f32 %v2319_v18, %v387_v53  ;;  %v1155_v53 = vld [vmem:[#allocation10 + $0x10] sm:$0xff]  ;;  %v1166_v3 = vld [vmem:[#allocation10 + $0x68] sm:$0xff] }
  0xba   : > { %v484_v36 = vadd.f32 %v476_v7, %v464_v22  ;;  %v466_v37 = vadd.f32 %v458_v10, %v445_v23  ;;  %v447_v38 = vadd.f32 %v439_v11, %v426_v24  ;;  %v460_v28 = vmul.f32 %v2321_v19, %v2347_v40  ;;  %v2407_v10 = vld [vmem:[#allocation8] ss:$0 sm:$0xff]  ;;  %v2409_v16 = vld [vmem:[#allocation8 + $0x1] ss:$0 sm:$0xff]  ;;  %v2417_v24 = vld [vmem:[%s2727_s3] ss:$0 sm:$0xff] }
  0xbb   : > { %1618 = vmatpush3.bf16.msra.mxu0 %v1615_v31  ;;  %v478_v31 = vmul.f32 %v2325_v21, %v2309_v13  ;;  %v485_v39 = vadd.f32 %v477_v27, %v465_v26  ;;  %v467_v12 = vadd.f32 %v459_v33, %v446_v32  ;;  %v479_v13 = vmul.f32 %v2325_v21, %v2332_v29  ;;  %v2419_v11 = vld [vmem:[#allocation8 + $0x2] ss:$0 sm:$0xff] }
  0xbc   : > { %1620 = vmatprep.subr.bf16.mxu0 %v1619_v41  ;;  %v461_v43 = vmul.f32 %v2321_v19, %v2350_v42  ;;  %v468_v45 = vadd.f32 %v460_v28, %v447_v38  ;;  %v480_v46 = vmul.f32 %v2325_v21, %v2335_v30  ;;  %v481_v49 = vmul.f32 %v2325_v21, %v2347_v40  ;;  %v1154_v42 = vld [vmem:[#allocation10 + $0x8] sm:$0xff]  ;;  %v1159_v40 = vld [vmem:[#allocation10 + $0x30] sm:$0xff] }
  0xbd   : > { %v486_v44 = vadd.f32 %v478_v31, %v466_v37  ;;  %v487_v47 = vadd.f32 %v479_v13, %v467_v12  ;;  %v1631_v52 = vpack.c.bf16 %v1154_v42, %v1153_v51  ;;  %v1639_v57 = vpack.c.bf16 %v1158_v56, %v1157_v55  ;;  %v2428_v37 = vld [vmem:[#allocation8 + $0x4] ss:$0 sm:$0xff]  ;;  %v2430_v38 = vld [vmem:[#allocation8 + $0x7] ss:$0 sm:$0xff]  ;;  %v2445_v51 = vld [vmem:[#allocation8 + $0x5] ss:$0 sm:$0xff] }
  0xbe   : > { %v488_v50 = vadd.f32 %v480_v46, %v468_v45  ;;  %v1643_v60 = vpack.c.bf16 %v1160_v58, %v1159_v40  ;;  %v1647_v62 = vpack.c.bf16 %v1162_v61, %v1161_v59  ;;  %v1651_v1 = vpack.c.bf16 %v1164_v0, %v1163_v63 }
  0xbf   : > { %1622 = vmatpush3.bf16.msra.mxu0 %v1619_v41  ;;  %v448_v41 = vadd.f32 %v440_v35, %v427_v34  ;;  %1632 = vmatprep.subr.bf16.mxu1 %v1631_v52  ;;  %v1655_v4 = vpack.c.bf16 %v1166_v3, %v1165_v2  ;;  %v2017_v8 = vmov 0.0   ;;  %v677_v23 = vmul.f32 0.0, %v2409_v16 }
  0xc0   : > { %1624 = vmatprep.subr.bf16.mxu0 %v1623_v54  ;;  %1634 = vmatpush3.bf16.msra.mxu1 %v1631_v52  ;;  %v626_v9 = vrot.slane %v2017_v8, 7  ;;  %v693_v20 = vrot.slane %v2017_v8, 1 }
  0xc1   : > { %v469_v48 = vadd.f32 %v461_v43, %v448_v41  ;;  %v2433_v43 = vld [vmem:[#allocation8 + $0x3] ss:$0 sm:$0xff] }
  0xc2   : > { %v643_v17 = vsel %vm642_vm0, 0.0, %v626_v9 }
  0xc3   : > { %1626 = vmatpush3.bf16.msra.mxu0 %v1623_v54  ;;  %v489_v29 = vadd.f32 %v481_v49, %v469_v48  ;;  %v1156_v54 = vld [vmem:[#allocation10 + $0x18] sm:$0xff]  ;;  %v656_v22 = vmul.f32 %v2407_v10, %v643_v17 }
  0xc4   : > { %1628 = vmatprep.subr.bf16.mxu0 %v1627_v5  ;;  %v1635_v30 = vpack.c.bf16 %v1156_v54, %v1155_v53  ;;  %v2450_v54 = vld [vmem:[#allocation8 + $0x8] ss:$0 sm:$0xff] }
  0xc5   : > { %v685_v32 = vadd.f32 %v677_v23, %v656_v22 }
  0xc6   : > { %1636 = vmatprep.subr.bf16.mxu1 %v1635_v30 }
  0xc7   : > { %1630 = vmatpush3.bf16.msra.mxu0 %v1627_v5  ;;  %1638 = vmatpush3.bf16.msra.mxu1 %v1635_v30  ;;  %v1167_v5 = vld [vmem:[#allocation10 + $0x70] sm:$0xff] }
  0xc8   : > { %1640 = vmatprep.subr.bf16.mxu1 %v1639_v57  ;;  %v1659_v7 = vpack.c.bf16 %v1168_v6, %v1167_v5 }
  0xca   : > { %1544 = vmatmul.mubr.f32.vlgmr.msra.gmra.mrb[0].mxu0 %v483_v25  ;;  %v2422_v25 = vsel %vm709_vm1, %v693_v20, 0.0 }
  0xcb   : > { %1546 = vmatprep.mubr.f32.mxu0 %v484_v36  ;;  %1642 = vmatpush3.bf16.msra.mxu1 %v1639_v57  ;;  %v723_v33 = vmul.f32 %v2419_v11, %v2422_v25 }
  0xcc   : > { %1644 = vmatprep.subr.bf16.mxu1 %v1643_v60 }
  0xcd   : > { %v731_v41 = vadd.f32 %v723_v33, %v685_v32 }
  0xce   : > { %1547 = vmatmul.mubr.f32.gmra.mrb[2].mxu0 %v485_v39 }
  0xcf   : > { %1549 = vmatprep.mubr.f32.mxu0 %v486_v44  ;;  %1646 = vmatpush3.bf16.msra.mxu1 %v1643_v60  ;;  %v2435_v44 = vld [vmem:[#allocation8 + $0x6] ss:$0 sm:$0xff] }
  0xd0   : > { %1648 = vmatprep.subr.bf16.mxu1 %v1647_v62 }
  0xd2   : > { %1550 = vmatmul.mubr.f32.gmra.mrb[4].mxu0 %v487_v47 }
  0xd3   : > { %1552 = vmatprep.mubr.f32.mxu0 %v488_v50  ;;  %1650 = vmatpush3.bf16.msra.mxu1 %v1647_v62  ;;  %v2442_v50 = vmul.f32 %v2435_v44, %v643_v17 }
  0xd4   : > { %1652 = vmatprep.subr.bf16.mxu1 %v1651_v1 }
  0xd6   : > { %1553 = vmatmul.mubr.f32.gmra.mrb[6].mxu0 %v489_v29 }
  0xd7   : > { %1654 = vmatpush3.bf16.msra.mxu1 %v1651_v1 }
  0xd8   : > { %1656 = vmatprep.subr.bf16.mxu1 %v1655_v4 }
  0xdb   : > { %1658 = vmatpush3.bf16.msra.mxu1 %v1655_v4 }
  0xdc   : > { %1660 = vmatprep.subr.bf16.mxu1 %v1659_v7 }
  0xdf   : > { %1662 = vmatpush3.bf16.msra.mxu1 %v1659_v7 }
 0x19d   : > { %v1545_v26 = vpop.f32.mrb[0].mxu0 }
 0x19e   : > { %v585_v27 = vadd.f32 %v1545_v26, %v2417_v24  ;;  %v579_v31 = vpop.f32.mrb[1].mxu0 }
 0x19f   : > { %v580_v34 = vadd.f32 %v2417_v24, %v579_v31 }
 0x1a0   : > { %v628_v35 = vrot.slane %v585_v27, 7  ;;  %v695_v36 = vrot.slane %v585_v27, 1  ;;  %v679_v48 = vmul.f32 %v2409_v16, %v585_v27  ;;  %v770_v29 = vmul.f32 %v2428_v37, %v585_v27 }
 0x1a1   : > { %v627_v28 = vrot.slane %v580_v34, 7  ;;  %v694_v39 = vrot.slane %v580_v34, 1  ;;  %v1548_v12 = vpop.f32.mrb[2].mxu0  ;;  %v835_v42 = vmul.f32 %v2430_v38, %v585_v27  ;;  %v678_v55 = vmul.f32 %v2409_v16, %v580_v34 }
 0x1a2   : > { %v645_v13 = vsel %vm642_vm0, 0.0, %v628_v35  ;;  %v595_v45 = vadd.f32 %v1548_v12, %v2417_v24  ;;  %v589_v46 = vpop.f32.mrb[3].mxu0  ;;  %v712_v49 = vsel %vm709_vm1, %v695_v36, 0.0  ;;  %v769_v57 = vmul.f32 %v2428_v37, %v580_v34 }
 0x1a3   : > { %v658_v47 = vmul.f32 %v2407_v10, %v645_v13  ;;  %v644_v52 = vsel %vm642_vm0, 0.0, %v627_v28  ;;  %v711_v53 = vsel %vm709_vm1, %v694_v39, 0.0  ;;  %v725_v59 = vmul.f32 %v2419_v11, %v712_v49 }
 0x1a4   : > { %v657_v30 = vmul.f32 %v2407_v10, %v644_v52  ;;  %v748_v56 = vmul.f32 %v2433_v43, %v644_v52  ;;  %v630_v60 = vrot.slane %v595_v45, 7  ;;  %v697_v61 = vrot.slane %v595_v45, 1 }
 0x1a5   : > { %v1551_v40 = vpop.f32.mrb[4].mxu0  ;;  %v687_v58 = vadd.f32 %v679_v48, %v658_v47  ;;  %v794_v63 = vmul.f32 %v2445_v51, %v712_v49  ;;  %v724_v1 = vmul.f32 %v2419_v11, %v711_v53  ;;  %v856_v3 = vmul.f32 %v2450_v54, %v712_v49 }
 0x1a6   : > { %v599_v62 = vpop.f32.mrb[5].mxu0  ;;  %v686_v0 = vadd.f32 %v678_v55, %v657_v30  ;;  %v756_v2 = vadd.f32 %v748_v56, %v731_v41  ;;  %v749_v4 = vmul.f32 %v2433_v43, %v645_v13  ;;  %v793_v5 = vmul.f32 %v2445_v51, %v711_v53 }
 0x1a7   : > { %v590_v6 = vadd.f32 %v2417_v24, %v589_v46  ;;  %v647_v9 = vsel %vm642_vm0, 0.0, %v630_v60  ;;  %v714_v17 = vsel %vm709_vm1, %v697_v61, 0.0  ;;  %v733_v22 = vadd.f32 %v725_v59, %v687_v58 }
 0x1a8   : > { %v732_v7 = vadd.f32 %v724_v1, %v686_v0  ;;  %v777_v8 = vadd.f32 %v769_v57, %v756_v2  ;;  %v814_v23 = vmul.f32 %v2435_v44, %v645_v13  ;;  %v681_v26 = vmul.f32 %v2409_v16, %v595_v45 }
 0x1a9   : > { %v1554_v20 = vpop.f32.mrb[6].mxu0  ;;  %v2468_v27 = vmul.f32 %v2428_v37, %v595_v45  ;;  %v837_v34 = vmul.f32 %v2430_v38, %v595_v45  ;;  %v629_v35 = vrot.slane %v590_v6, 7  ;;  %v660_v36 = vmul.f32 %v2407_v10, %v647_v9 }
 0x1aa   : > { %v2470_v31 = vpop.f32.mrb[7].mxu0  ;;  %v757_v32 = vadd.f32 %v749_v4, %v732_v7  ;;  %v801_v33 = vadd.f32 %v793_v5, %v777_v8  ;;  %v727_v28 = vmul.f32 %v2419_v11, %v714_v17  ;;  %v751_v39 = vmul.f32 %v2433_v43, %v647_v9 }
 0x1ab   : > { %v696_v12 = vrot.slane %v590_v6, 1  ;;  %v796_v46 = vmul.f32 %v2445_v51, %v714_v17  ;;  %v646_v47 = vsel %vm642_vm0, 0.0, %v629_v35  ;;  %v680_v49 = vmul.f32 %v2409_v16, %v590_v6 }
 0x1ac   : > { %v778_v13 = vadd.f32 %v770_v29, %v757_v32  ;;  %v822_v41 = vadd.f32 %v814_v23, %v801_v33  ;;  %v659_v48 = vmul.f32 %v2407_v10, %v646_v47  ;;  %v750_v52 = vmul.f32 %v2433_v43, %v646_v47  ;;  %v2487_v29 = vld [vmem:[%s2729_s5] ss:$0 sm:$0xff] }
 0x1ad   : > { %v713_v45 = vsel %vm709_vm1, %v696_v12, 0.0  ;;  %v771_v55 = vmul.f32 %v2428_v37, %v590_v6  ;;  %v815_v56 = vmul.f32 %v2435_v44, %v646_v47  ;;  %v2491_v60 = vadd.f32 %v1551_v40, %v2417_v24 }
 0x1ae   : > { %v802_v53 = vadd.f32 %v794_v63, %v778_v13  ;;  %v843_v30 = vadd.f32 %v835_v42, %v822_v41  ;;  %v688_v57 = vadd.f32 %v680_v49, %v659_v48  ;;  %v726_v58 = vmul.f32 %v2419_v11, %v713_v45 }
 0x1af   : > { %v758_v59 = vadd.f32 %v750_v52, %v733_v22  ;;  %v689_v0 = vadd.f32 %v681_v26, %v660_v36  ;;  %v836_v42 = vmul.f32 %v2430_v38, %v590_v6  ;;  %v795_v4 = vmul.f32 %v2445_v51, %v713_v45 }
 0x1b0   : > { %v864_v61 = vadd.f32 %v856_v3, %v843_v30  ;;  %v823_v63 = vadd.f32 %v815_v56, %v802_v53  ;;  %v734_v1 = vadd.f32 %v726_v58, %v688_v57  ;;  %v632_v5 = vrot.slane %v2491_v60, 7 }
 0x1b1   : > { %v779_v2 = vadd.f32 %v771_v55, %v758_v59  ;;  %v857_v22 = vmul.f32 %v2450_v54, %v713_v45  ;;  %v699_v40 = vrot.slane %v2491_v60, 1  ;;  %v816_v3 = vmul.f32 %v2435_v44, %v647_v9 }
 0x1b2   : > { %v2497_v7 = vadd.f32 %v2487_v29, %v864_v61  ;;  %v844_v8 = vadd.f32 %v836_v42, %v823_v63  ;;  %v759_v23 = vadd.f32 %v751_v39, %v734_v1  ;;  %v600_v6 = vadd.f32 %v2417_v24, %v599_v62 }
 0x1b3   : > { %v803_v26 = vadd.f32 %v795_v4, %v779_v2  ;;  %v649_v35 = vsel %vm642_vm0, 0.0, %v632_v5  ;;  %v716_v36 = vsel %vm709_vm1, %v699_v40, 0.0  ;;  %v735_v12 = vadd.f32 %v727_v28, %v689_v0 }
 0x1b4   : > { %v887_v32 = vmin.f32 %v2497_v7, 20.0  ;;  %v865_v33 = vadd.f32 %v857_v22, %v844_v8  ;;  %v858_v13 = vmul.f32 %v2450_v54, %v714_v17  ;;  %v2508_v47 = vadd.f32 %v1554_v20, %v2417_v24 }
 0x1b5   : > { %v824_v41 = vadd.f32 %v816_v3, %v803_v26  ;;  %v683_v62 = vmul.f32 %v2409_v16, %v2491_v60  ;;  %v774_v39 = vmul.f32 %v2428_v37, %v2491_v60  ;;  %v662_v45 = vmul.f32 %v2407_v10, %v649_v35 }
 0x1b6   : > { %v895_v48 = vmul.f32 1.442695, %v887_v32  ;;  %v2511_v9 = vadd.f32 %v2487_v29, %v865_v33  ;;  %v729_v28 = vmul.f32 %v2419_v11, %v716_v36  ;;  %v631_v17 = vrot.slane %v600_v6, 7 }
 0x1b7   : > { %v845_v49 = vadd.f32 %v837_v34, %v824_v41  ;;  %v753_v52 = vmul.f32 %v2433_v43, %v649_v35  ;;  %v698_v53 = vrot.slane %v600_v6, 1  ;;  %v682_v56 = vmul.f32 %v2409_v16, %v600_v6 }
 0x1b8   : > { %1755 = vpow2.f32 %v895_v48  ;;  %v888_v20 = vmin.f32 %v2511_v9, 20.0  ;;  %v648_v55 = vsel %vm642_vm0, 0.0, %v631_v17  ;;  %v780_v57 = vadd.f32 %v2468_v27, %v759_v23 }
 0x1b9   : > { %v866_v30 = vadd.f32 %v858_v13, %v845_v49  ;;  %v661_v34 = vmul.f32 %v2407_v10, %v648_v55  ;;  %v715_v59 = vsel %vm709_vm1, %v698_v53, 0.0  ;;  %v752_v61 = vmul.f32 %v2433_v43, %v648_v55 }
 0x1ba   : > { %v897_v58 = vmul.f32 1.442695, %v888_v20  ;;  %v728_v63 = vmul.f32 %v2419_v11, %v715_v59  ;;  %v773_v42 = vmul.f32 %v2428_v37, %v600_v6  ;;  %v804_v1 = vadd.f32 %v796_v46, %v780_v57 }
 0x1bb   : > { %v2528_v0 = vadd.f32 %v2487_v29, %v866_v30  ;;  %v690_v2 = vadd.f32 %v682_v56, %v661_v34  ;;  %v760_v4 = vadd.f32 %v752_v61, %v735_v12  ;;  %v817_v27 = vmul.f32 %v2435_v44, %v648_v55 }
 0x1bc   : > { %1757 = vpow2.f32 %v897_v58  ;;  %v691_v8 = vadd.f32 %v683_v62, %v662_v45  ;;  %v797_v22 = vmul.f32 %v2445_v51, %v715_v59  ;;  %v740_v40 = vrot.slane %v2508_v47, 7 }
 0x1bd   : > { %v889_v5 = vmin.f32 %v2528_v0, 20.0  ;;  %v736_v3 = vadd.f32 %v728_v63, %v690_v2  ;;  %v781_v23 = vadd.f32 %v773_v42, %v760_v4  ;;  %v825_v26 = vadd.f32 %v817_v27, %v804_v1 }
 0x1be   : > { %v838_v32 = vmul.f32 %v2430_v38, %v600_v6  ;;  %v818_v46 = vmul.f32 %v2435_v44, %v649_v35  ;;  %v859_v13 = vmul.f32 %v2450_v54, %v715_v59  ;;  %v742_v12 = vsel %vm642_vm0, 0.0, %v740_v40 }
 0x1bf   : > { %v899_v33 = vmul.f32 1.442695, %v889_v5  ;;  %v761_v41 = vadd.f32 %v753_v52, %v736_v3  ;;  %v805_v48 = vadd.f32 %v797_v22, %v781_v23  ;;  %v785_v62 = vrot.slane %v2508_v47, 1 }
 0x1c0   : > { %v846_v49 = vadd.f32 %v838_v32, %v825_v26  ;;  %v798_v45 = vmul.f32 %v2445_v51, %v716_v36  ;;  %v839_v17 = vmul.f32 %v2430_v38, %v2491_v60  ;;  %v610_v6 = vadd.f32 %v2417_v24, %v2470_v31 }
 0x1c1   : > { %1759 = vpow2.f32 %v899_v33  ;;  %v737_v35 = vadd.f32 %v729_v28, %v691_v8  ;;  %v860_v53 = vmul.f32 %v2450_v54, %v716_v36  ;;  %v826_v30 = vadd.f32 %v818_v46, %v805_v48 }
 0x1c2   : > { %v1756_v20 = vpop.eup %1755  ;;  %v867_v55 = vadd.f32 %v859_v13, %v846_v49  ;;  %v755_v52 = vmul.f32 %v2433_v43, %v742_v12  ;;  %v776_v56 = vmul.f32 %v2428_v37, %v2508_v47  ;;  %v633_v57 = vrot.slane %v610_v6, 7 }
 0x1c3   : > { %v700_v58 = vrot.slane %v610_v6, 1  ;;  %v847_v34 = vadd.f32 %v839_v17, %v826_v30  ;;  %v787_v60 = vsel %vm709_vm1, %v785_v62, 0.0  ;;  %v782_v24 = vadd.f32 %v774_v39, %v761_v41 }
 0x1c4   : > { %v2551_v59 = vadd.f32 %v2487_v29, %v867_v55  ;;  %v650_v31 = vsel %vm642_vm0, 0.0, %v633_v57  ;;  %v684_v36 = vmul.f32 %v2409_v16, %v610_v6  ;;  %v911_v61 = vadd.f32 1.0, %v1756_v20 }
 0x1c5   : > { %v717_v28 = vsel %vm709_vm1, %v700_v58, 0.0  ;;  %v868_v42 = vadd.f32 %v860_v53, %v847_v34  ;;  %v663_v2 = vmul.f32 %v2407_v10, %v650_v31  ;;  %v775_v4 = vmul.f32 %v2428_v37, %v610_v6 }
 0x1c6   : > { %v1758_v63 = vpop.eup %1757  ;;  %v890_v1 = vmin.f32 %v2551_v59, 20.0  ;;  %v730_v5 = vmul.f32 %v2419_v11, %v717_v28  ;;  %v754_v39 = vmul.f32 %v2433_v43, %v650_v31  ;;  %v806_v8 = vadd.f32 %v798_v45, %v782_v24 }
 0x1c7   : > { %v912_v27 = vadd.f32 1.0, %v1758_v63  ;;  %v2563_v22 = vadd.f32 %v2487_v29, %v868_v42  ;;  %v692_v40 = vadd.f32 %v684_v36, %v663_v2  ;;  %v819_v3 = vmul.f32 %v2435_v44, %v650_v31 }
 0x1c8   : > { %v901_v16 = vmul.f32 1.442695, %v890_v1  ;;  %v762_v26 = vadd.f32 %v754_v39, %v737_v35  ;;  %v840_v32 = vmul.f32 %v2430_v38, %v610_v6  ;;  %v919_v10 = vmul.f32 %v911_v61, %v911_v61 }
 0x1c9   : > { %v920_v23 = vmul.f32 %v912_v27, %v912_v27  ;;  %v891_v37 = vmin.f32 %v2563_v22, 20.0  ;;  %v738_v33 = vadd.f32 %v730_v5, %v692_v40  ;;  %v827_v11 = vadd.f32 %v819_v3, %v806_v8 }
 0x1ca   : > { %1761 = vpow2.f32 %v901_v16  ;;  %v783_v13 = vadd.f32 %v775_v4, %v762_v26  ;;  %v799_v41 = vmul.f32 %v2445_v51, %v717_v28  ;;  %v861_v48 = vmul.f32 %v2450_v54, %v717_v28 }
 0x1cb   : > { %v1760_v46 = vpop.eup %1759  ;;  %v944_v43 = vadd.f32 1.0, %v920_v23  ;;  %v903_v49 = vmul.f32 1.442695, %v891_v37  ;;  %v763_v62 = vadd.f32 %v755_v52, %v738_v33  ;;  %v848_v45 = vadd.f32 %v840_v32, %v827_v11 }
 0x1cc   : > { %v943_v17 = vadd.f32 1.0, %v919_v10  ;;  %v800_v6 = vmul.f32 %v2445_v51, %v787_v60  ;;  %v820_v20 = vmul.f32 %v2435_v44, %v742_v12  ;;  %v807_v35 = vadd.f32 %v799_v41, %v783_v13 }
 0x1cd   : > { %1763 = vrcp.f32 %v944_v43  ;;  %v784_v53 = vadd.f32 %v776_v56, %v763_v62  ;;  %v869_v30 = vadd.f32 %v861_v48, %v848_v45  ;;  %v913_v55 = vadd.f32 1.0, %v1760_v46 }
 0x1ce   : > { %1765 = vpow2.f32 %v903_v49  ;;  %v841_v57 = vmul.f32 %v2430_v38, %v2508_v47  ;;  %v828_v58 = vadd.f32 %v820_v20, %v807_v35  ;;  %v842_v52 = vmul.f32 0.0, %v2430_v38 }
 0x1cf   : > { %1767 = vrcp.f32 %v943_v17  ;;  %v808_v34 = vadd.f32 %v800_v6, %v784_v53  ;;  %v2576_v24 = vadd.f32 %v2487_v29, %v869_v30  ;;  %v921_v31 = vmul.f32 %v913_v55, %v913_v55 }
 0x1d0   : > { %v863_v44 = vmul.f32 %v2450_v54, %v2422_v25  ;;  %v862_v51 = vmul.f32 %v2450_v54, %v787_v60  ;;  %v849_v12 = vadd.f32 %v841_v57, %v828_v58  ;;  %v1448_v56 = vadd.f32 -1.0, %v920_v23 }
 0x1d1   : > { %v829_v36 = vadd.f32 %v2442_v50, %v808_v34  ;;  %v892_v47 = vmin.f32 %v2576_v24, 20.0  ;;  %v945_v28 = vadd.f32 1.0, %v921_v31  ;;  %v1447_v1 = vadd.f32 -1.0, %v919_v10 }
 0x1d2   : > { %v870_v61 = vadd.f32 %v862_v51, %v849_v12  ;;  %v1449_v27 = vadd.f32 -1.0, %v921_v31  ;;  %v936_v25 = vmul.f32 %v1448_v56, %v2511_v9 }
 0x1d3   : > { %v850_v42 = vadd.f32 %v842_v52, %v829_v36  ;;  %v905_v38 = vmul.f32 1.442695, %v892_v47  ;;  %1769 = vrcp.f32 %v945_v28  ;;  %v935_v8 = vmul.f32 %v1447_v1, %v2497_v7 }
 0x1d4   : > { %v1762_v63 = vpop.eup %1761  ;;  %v2584_v4 = vadd.f32 %v2487_v29, %v870_v61  ;;  %v937_v23 = vmul.f32 %v1449_v27, %v2528_v0 }
 0x1d5   : > { %v914_v2 = vadd.f32 1.0, %v1762_v63  ;;  %1771 = vpow2.f32 %v905_v38  ;;  %v871_v54 = vadd.f32 %v863_v44, %v850_v42 }
 0x1d6   : > { %v893_v5 = vmin.f32 %v2584_v4, 20.0 }
 0x1d7   : > { %v1764_v60 = vpop.eup %1763  ;;  %v922_v50 = vmul.f32 %v914_v2, %v914_v2  ;;  %v2591_v9 = vadd.f32 %v2487_v29, %v871_v54 }
 0x1d8   : > { %v1766_v39 = vpop.eup %1765  ;;  %v960_v16 = vmul.f32 %v1764_v60, %v936_v25  ;;  %v907_v33 = vmul.f32 1.442695, %v893_v5 }
 0x1d9   : > { %v1768_v40 = vpop.eup %1767  ;;  %v946_v3 = vadd.f32 1.0, %v922_v50  ;;  %v1450_v37 = vadd.f32 -1.0, %v922_v50  ;;  %v915_v11 = vadd.f32 1.0, %v1766_v39 }
 0x1da   : > { %v959_v26 = vmul.f32 %v1768_v40, %v935_v8  ;;  %v976_v32 = vrot.slane %v960_v16, 2  ;;  %v1017_v10 = vrot.slane %v960_v16, 1  ;;  %v1073_v7 = vrot.slane %v960_v16, 7 }
 0x1db   : > { %1773 = vrcp.f32 %v946_v3  ;;  %v1113_v13 = vrot.slane %v960_v16, 6  ;;  %v1057_v53 = vmul.f32 %v2319_v18, %v960_v16  ;;  %v938_v12 = vmul.f32 %v1450_v37, %v2551_v59 }
 0x1dc   : > { %v975_v46 = vrot.slane %v959_v26, 2  ;;  %v1016_v43 = vrot.slane %v959_v26, 1  ;;  %v1072_v41 = vrot.slane %v959_v26, 7  ;;  %v1112_v48 = vrot.slane %v959_v26, 6 }
 0x1dd   : > { %v993_v49 = vsel %vm991_vm2, %v976_v32, 0.0  ;;  %v1033_v0 = vsel %vm709_vm1, %v1017_v10, 0.0  ;;  %v1770_v6 = vpop.eup %1769  ;;  %1775 = vpow2.f32 %v907_v33  ;;  %v1089_v34 = vsel %vm642_vm0, 0.0, %v1073_v7 }
 0x1de   : > { %v992_v62 = vsel %vm991_vm2, %v975_v46, 0.0  ;;  %v1032_v45 = vsel %vm709_vm1, %v1016_v43, 0.0  ;;  %v1001_v29 = vmul.f32 %v2311_v14, %v993_v49  ;;  %v1041_v17 = vmul.f32 %v2313_v15, %v1033_v0 }
 0x1df   : > { %v1000_v20 = vmul.f32 %v2311_v14, %v992_v62  ;;  %v1040_v35 = vmul.f32 %v2313_v15, %v1032_v45  ;;  %v1772_v30 = vpop.eup %1771  ;;  %v1088_v55 = vsel %vm642_vm0, 0.0, %v1072_v41  ;;  %v1129_v57 = vsel %vm1128_vm3, 0.0, %v1112_v48 }
 0x1e0   : > { %v1049_v58 = vadd.f32 %v1041_v17, %v1001_v29  ;;  %v916_v52 = vadd.f32 1.0, %v1772_v30  ;;  %v1056_v44 = vmul.f32 %v2319_v18, %v959_v26  ;;  %v1130_v51 = vsel %vm1128_vm3, 0.0, %v1113_v13 }
 0x1e1   : > { %v1048_v31 = vadd.f32 %v1040_v35, %v1000_v20  ;;  %v1097_v36 = vmul.f32 %v2321_v19, %v1089_v34  ;;  %v961_v47 = vmul.f32 %v1770_v6, %v937_v23  ;;  %v1096_v63 = vmul.f32 %v2321_v19, %v1088_v55 }
 0x1e2   : > { %v1065_v56 = vadd.f32 %v1057_v53, %v1049_v58  ;;  %v924_v28 = vmul.f32 %v916_v52, %v916_v52  ;;  %v1137_v42 = vmul.f32 %v2325_v21, %v1129_v57  ;;  %v1138_v1 = vmul.f32 %v2325_v21, %v1130_v51 }
 0x1e3   : > { %v1064_v61 = vadd.f32 %v1056_v44, %v1048_v31  ;;  %v977_v2 = vrot.slane %v961_v47, 2  ;;  %v1018_v27 = vrot.slane %v961_v47, 1  ;;  %v1074_v50 = vrot.slane %v961_v47, 7 }
 0x1e4   : > { %v1105_v38 = vadd.f32 %v1097_v36, %v1065_v56  ;;  %v948_v54 = vadd.f32 1.0, %v924_v28  ;;  %v923_v59 = vmul.f32 %v915_v11, %v915_v11  ;;  %v1114_v16 = vrot.slane %v961_v47, 6 }
 0x1e5   : > { %v1774_v25 = vpop.eup %1773  ;;  %v1104_v60 = vadd.f32 %v1096_v63, %v1064_v61  ;;  %v994_v39 = vsel %vm991_vm2, %v977_v2, 0.0  ;;  %v1034_v8 = vsel %vm709_vm1, %v1018_v27, 0.0  ;;  %v1090_v26 = vsel %vm642_vm0, 0.0, %v1074_v50 }
 0x1e6   : > { %v1146_v5 = vadd.f32 %v1138_v1, %v1105_v38  ;;  %1777 = vrcp.f32 %v948_v54  ;;  %v1002_v3 = vmul.f32 %v2311_v14, %v994_v39  ;;  %v1042_v23 = vmul.f32 %v2313_v15, %v1034_v8  ;;  %v2638_v54 = vld [vmem:[#allocation5 + $0x1] ss:$0 sm:$0xff] }
 0x1e7   : > { %v1145_v40 = vadd.f32 %v1137_v42, %v1104_v60  ;;  %v962_v32 = vmul.f32 %v1774_v25, %v938_v12  ;;  %v1776_v10 = vpop.eup %1775  ;;  %v1452_v37 = vadd.f32 -1.0, %v924_v28  ;;  %v1058_v33 = vmul.f32 %v2319_v18, %v961_v47 }
 0x1e8   : > { %v947_v11 = vadd.f32 1.0, %v923_v59  ;;  %v894_v46 = vmin.f32 %v2591_v9, 20.0  ;;  %v1050_v43 = vadd.f32 %v1042_v23, %v1002_v3  ;;  %v1131_v7 = vsel %vm1128_vm3, 0.0, %v1114_v16  ;;  %v2644_v23 = vld [vmem:[#allocation5 + $0x2] ss:$0 sm:$0xff] }
 0x1e9   : > { %1587 = vmatprep.mubr.f32.mxu1 %v1145_v40  ;;  %v978_v13 = vrot.slane %v962_v32, 2  ;;  %v1019_v41 = vrot.slane %v962_v32, 1  ;;  %v1098_v48 = vmul.f32 %v2321_v19, %v1090_v26  ;;  %v1075_v49 = vrot.slane %v962_v32, 7 }
 0x1ea   : > { %1588 = vmatmul.mubr.f32.vlgmr.msra.gmra.mrb[0].mxu1 %v1146_v5  ;;  %v1115_v0 = vrot.slane %v962_v32, 6  ;;  %1779 = vrcp.f32 %v947_v11  ;;  %v1066_v62 = vadd.f32 %v1058_v33, %v1050_v43  ;;  %v917_v17 = vadd.f32 1.0, %v1776_v10  ;;  %v1790_v33 = vld [vmem:[#allocation5 + $0x3] ss:$0 sm:$0xff] }
 0x1eb   : > { %v995_v45 = vsel %vm991_vm2, %v978_v13, 0.0  ;;  %v1035_v29 = vsel %vm709_vm1, %v1019_v41, 0.0  ;;  %v1139_v53 = vmul.f32 %v2325_v21, %v1131_v7  ;;  %v1091_v30 = vsel %vm642_vm0, 0.0, %v1075_v49 }
 0x1ec   : > { %v1003_v6 = vmul.f32 %v2311_v14, %v995_v45  ;;  %v1043_v20 = vmul.f32 %v2313_v15, %v1035_v29  ;;  %v1106_v35 = vadd.f32 %v1098_v48, %v1066_v62  ;;  %v925_v55 = vmul.f32 %v917_v17, %v917_v17 }
 0x1ed   : > { %v940_v57 = vmul.f32 %v1452_v37, %v2576_v24  ;;  %v1059_v34 = vmul.f32 %v2319_v18, %v962_v32  ;;  %v909_v52 = vmul.f32 1.442695, %v894_v46  ;;  %v1132_v44 = vsel %vm1128_vm3, 0.0, %v1115_v0 }
 0x1ee   : > { %v1051_v58 = vadd.f32 %v1043_v20, %v1003_v6  ;;  %v1147_v31 = vadd.f32 %v1139_v53, %v1106_v35  ;;  %v1451_v51 = vadd.f32 -1.0, %v923_v59  ;;  %v949_v12 = vadd.f32 1.0, %v925_v55 }
 0x1ef   : > { %v1099_v15 = vmul.f32 %v2321_v19, %v1091_v30  ;;  %1781 = vpow2.f32 %v909_v52  ;;  %v1140_v24 = vmul.f32 %v2325_v21, %v1132_v44  ;;  %v2635_v19 = vld [vmem:[#allocation5] ss:$0 sm:$0xff]  ;;  %v1453_v60 = vadd.f32 -1.0, %v925_v55 }
 0x1f0   : > { %v1778_v14 = vpop.eup %1777  ;;  %v1067_v56 = vadd.f32 %v1059_v34, %v1051_v58  ;;  %1590 = vmatprep.mubr.f32.mxu1 %v1147_v31  ;;  %1783 = vrcp.f32 %v949_v12  ;;  %v939_v28 = vmul.f32 %v1451_v51, %v2563_v22 }
 0x1f1   : > { %v964_v36 = vmul.f32 %v1778_v14, %v940_v57  ;;  %v941_v46 = vmul.f32 %v1453_v60, %v2584_v4  ;;  %v1791_v4 = vld [vmem:[#allocation5 + $0x4] ss:$0 sm:$0xff] }
 0x1f2   : > { %v1107_v47 = vadd.f32 %v1099_v15, %v1067_v56 }
 0x1f3   : > { %v980_v18 = vrot.slane %v964_v36, 2  ;;  %v1021_v61 = vrot.slane %v964_v36, 1  ;;  %v1077_v63 = vrot.slane %v964_v36, 7  ;;  %v1117_v22 = vrot.slane %v964_v36, 6 }
 0x1f4   : > { %v1780_v42 = vpop.eup %1779  ;;  %v1148_v38 = vadd.f32 %v1140_v24, %v1107_v47  ;;  %v1061_v26 = vmul.f32 %v2644_v23, %v964_v36 }
 0x1f5   : > { %v963_v1 = vmul.f32 %v1780_v42, %v939_v28  ;;  %v997_v2 = vsel %vm991_vm2, %v980_v18, 0.0  ;;  %v1037_v27 = vsel %vm709_vm1, %v1021_v61, 0.0  ;;  %v1093_v39 = vsel %vm642_vm0, 0.0, %v1077_v63 }
 0x1f6   : > { %1591 = vmatmul.mubr.f32.gmra.mrb[2].mxu1 %v1148_v38  ;;  %v1005_v25 = vmul.f32 %v2635_v19, %v997_v2  ;;  %v1045_v21 = vmul.f32 %v2638_v54, %v1037_v27  ;;  %v1101_v11 = vmul.f32 %v1790_v33, %v1093_v39  ;;  %v1134_v41 = vsel %vm1128_vm3, 0.0, %v1117_v22 }
 0x1f7   : > { %v979_v50 = vrot.slane %v963_v1, 2  ;;  %v1020_v59 = vrot.slane %v963_v1, 1  ;;  %v1076_v5 = vrot.slane %v963_v1, 7  ;;  %v1116_v8 = vrot.slane %v963_v1, 6 }
 0x1f8   : > { %v1053_v16 = vadd.f32 %v1045_v21, %v1005_v25  ;;  %v1060_v0 = vmul.f32 %v2644_v23, %v963_v1  ;;  %v1142_v55 = vmul.f32 %v1791_v4, %v1134_v41 }
 0x1f9   : > { %v996_v40 = vsel %vm991_vm2, %v979_v50, 0.0  ;;  %v1036_v3 = vsel %vm709_vm1, %v1020_v59, 0.0  ;;  %v1782_v32 = vpop.eup %1781  ;;  %v1092_v7 = vsel %vm642_vm0, 0.0, %v1076_v5  ;;  %v1133_v62 = vsel %vm1128_vm3, 0.0, %v1116_v8 }
 0x1fa   : > { %v1004_v10 = vmul.f32 %v2635_v19, %v996_v40  ;;  %v1044_v37 = vmul.f32 %v2638_v54, %v1036_v3  ;;  %v1784_v43 = vpop.eup %1783  ;;  %v1069_v13 = vadd.f32 %v1061_v26, %v1053_v16  ;;  %v918_v48 = vadd.f32 1.0, %v1782_v32 }
 0x1fb   : > { %v965_v45 = vmul.f32 %v1784_v43, %v941_v46  ;;  %v1100_v20 = vmul.f32 %v1790_v33, %v1092_v7  ;;  %v1141_v30 = vmul.f32 %v1791_v4, %v1133_v62 }
 0x1fc   : > { %v1052_v49 = vadd.f32 %v1044_v37, %v1004_v10  ;;  %v1109_v29 = vadd.f32 %v1101_v11, %v1069_v13  ;;  %v926_v17 = vmul.f32 %v918_v48, %v918_v48 }
 0x1fd   : > { %v981_v35 = vrot.slane %v965_v45, 2  ;;  %v1022_v53 = vrot.slane %v965_v45, 1  ;;  %v1078_v57 = vrot.slane %v965_v45, 7  ;;  %v1118_v58 = vrot.slane %v965_v45, 6 }
 0x1fe   : > { %v1068_v6 = vadd.f32 %v1060_v0, %v1052_v49  ;;  %v950_v44 = vadd.f32 1.0, %v926_v17  ;;  %v1150_v51 = vadd.f32 %v1142_v55, %v1109_v29  ;;  %v1062_v47 = vmul.f32 %v2644_v23, %v965_v45 }
 0x1ff   : > { %v998_v52 = vsel %vm991_vm2, %v981_v35, 0.0  ;;  %v1038_v31 = vsel %vm709_vm1, %v1022_v53, 0.0  ;;  %v1094_v15 = vsel %vm642_vm0, 0.0, %v1078_v57  ;;  %v1135_v24 = vsel %vm1128_vm3, 0.0, %v1118_v58 }
 0x200   : > { %v1108_v34 = vadd.f32 %v1100_v20, %v1068_v6  ;;  %v1006_v12 = vmul.f32 %v2635_v19, %v998_v52  ;;  %v1046_v14 = vmul.f32 %v2638_v54, %v1038_v31  ;;  %1785 = vrcp.f32 %v950_v44 }
 0x201   : > { %v1102_v18 = vmul.f32 %v1790_v33, %v1094_v15  ;;  %v1143_v63 = vmul.f32 %v1791_v4, %v1135_v24  ;;  %v1454_v42 = vadd.f32 -1.0, %v926_v17 }
 0x202   : > { %v1149_v56 = vadd.f32 %v1141_v30, %v1108_v34  ;;  %v1054_v36 = vadd.f32 %v1046_v14, %v1006_v12 }
 0x203   : > { %v942_v1 = vmul.f32 %v1454_v42, %v2591_v9 }
 0x204   : > { %1593 = vmatprep.mubr.f32.mxu1 %v1149_v56  ;;  %v1070_v28 = vadd.f32 %v1062_v47, %v1054_v36 }
 0x205   : > { %1594 = vmatmul.mubr.f32.gmra.mrb[4].mxu1 %v1150_v51 }
 0x206   : > { %v1110_v61 = vadd.f32 %v1102_v18, %v1070_v28 }
 0x208   : > { %v1151_v38 = vadd.f32 %v1143_v63, %v1110_v61 }
 0x20a   : > { %1596 = vmatprep.mubr.f32.mxu1 %v1151_v38  ;;  %v1786_v2 = vpop.eup %1785 }
 0x20b   : > { %v966_v27 = vmul.f32 %v1786_v2, %v942_v1 }
 0x20d   : > { %v982_v25 = vrot.slane %v966_v27, 2  ;;  %v1023_v21 = vrot.slane %v966_v27, 1  ;;  %v1079_v22 = vrot.slane %v966_v27, 7  ;;  %v1119_v59 = vrot.slane %v966_v27, 6 }
 0x20e   : > { %v1063_v9 = vmul.f32 %v2644_v23, %v966_v27 }
 0x20f   : > { %v999_v60 = vsel %vm991_vm2, %v982_v25, 0.0  ;;  %v1039_v50 = vsel %vm709_vm1, %v1023_v21, 0.0  ;;  %v1095_v8 = vsel %vm642_vm0, 0.0, %v1079_v22  ;;  %v1136_v40 = vsel %vm1128_vm3, 0.0, %v1119_v59 }
 0x210   : > { %v1007_v5 = vmul.f32 %v2635_v19, %v999_v60  ;;  %v1047_v39 = vmul.f32 %v2638_v54, %v1039_v50  ;;  %v1103_v26 = vmul.f32 %v1790_v33, %v1095_v8  ;;  %v1144_v10 = vmul.f32 %v1791_v4, %v1136_v40  ;;  %v1455_v19 = vld [vmem:[%s2731_s7] ss:$0 sm:$0xff] }
 0x212   : > { %v1055_v16 = vadd.f32 %v1047_v39, %v1007_v5 }
 0x214   : > { %v1071_v3 = vadd.f32 %v1063_v9, %v1055_v16 }
 0x216   : > { %v1111_v32 = vadd.f32 %v1103_v26, %v1071_v3 }
 0x218   : > { %v1152_v37 = vadd.f32 %v1144_v10, %v1111_v32 }
 0x21a   : > { %1597 = vmatmul.mubr.f32.gmra.mrb[6].mxu1 %v1152_v37 }
 0x2bd   : > { %v1589_v11 = vpop.f32.mrb[0].mxu1 }
 0x2be   : > { %v1248_v54 = vadd.f32 %v1589_v11, %v1455_v19  ;;  %v1242_v46 = vpop.f32.mrb[1].mxu1 }
 0x2bf   : > { %v1243_v43 = vadd.f32 %v1455_v19, %v1242_v46 }
 0x2c0   : > { %1282 = vst [vmem:[%s379_s16 + $0x8] sm:$0xff] %v1248_v54 }
 0x2c1   : > { %1281 = vst [vmem:[%s379_s16] sm:$0xff] %v1243_v43 }
 0x2c9   : > { %v1592_v23 = vpop.f32.mrb[2].mxu1 }
 0x2ca   : > { %v1258_v7 = vadd.f32 %v1592_v23, %v1455_v19  ;;  %v1252_v33 = vpop.f32.mrb[3].mxu1 }
 0x2cb   : > { %v1253_v13 = vadd.f32 %v1455_v19, %v1252_v33 }
 0x2cc   : > { %1284 = vst [vmem:[%s379_s16 + $0x18] sm:$0xff] %v1258_v7 }
 0x2cd   : > { %1283 = vst [vmem:[%s379_s16 + $0x10] sm:$0xff] %v1253_v13 }
 0x2d8   : > { %v1595_v41 = vpop.f32.mrb[4].mxu1 }
 0x2d9   : > { %v1268_v48 = vadd.f32 %v1595_v41, %v1455_v19  ;;  %v1262_v49 = vpop.f32.mrb[5].mxu1 }
 0x2da   : > { %v1263_v0 = vadd.f32 %v1455_v19, %v1262_v49 }
 0x2db   : > { %1286 = vst [vmem:[%s379_s16 + $0x28] sm:$0xff] %v1268_v48 }
 0x2dc   : > { %1285 = vst [vmem:[%s379_s16 + $0x20] sm:$0xff] %v1263_v0 }
 0x2ed   : > { %v1598_v62 = vpop.f32.mrb[6].mxu1 }
 0x2ee   : > { %v1278_v45 = vadd.f32 %v1598_v62, %v1455_v19  ;;  %v1272_v29 = vpop.f32.mrb[7].mxu1 }
 0x2ef   : > { %v1273_v17 = vadd.f32 %v1455_v19, %v1272_v29 }
 0x2f0   : > { %1288 = vst [vmem:[%s379_s16 + $0x38] sm:$0xff] %v1278_v45 }
 0x2f1   : > { %1287 = vst [vmem:[%s379_s16 + $0x30] sm:$0xff] %v1273_v17 }
 0x2f2   : > { %1947 = shalt.err (!%p1944_p13)
}
 0x2f3   : > { %s1948_s19 = scalar_lea.hbm %s2680_s17, 1024  ;;  %s1952_s4 = scalar_lea.hbm %s2732_s8, 2048 }
 0x2f4   : > { %p1949_p0 = scmp.ne.s32.totalorder %s2680_s17, %s1948_s19  ;;  %p1953_p9 = scmp.lt.u32.totalorder %s2680_s17, %s2732_s8 }
 0x2f5   : > { %p1954_p12 = scmp.lt.u32.totalorder %s1952_s4, %s1948_s19  ;;  %p1956_p4 = scmp.lt.u32.totalorder %s1948_s19, %s2680_s17 }
 0x2f6   : > { %p1950_p5 = pnand %p1949_p0, %p2227_p1 }
 0x2f7   : > { %p1955_p2 = por %p1954_p12, %p1953_p9 }
 0x2f8   : > { %p1951_p11 = pneg %p1950_p5 }
 0x2f9   : > { %p1957_p6 = por %p1956_p4, %p1955_p2 }
 0x2fb   : > { %p1958_p8 = pnand %p1957_p6, %p1951_p11 }
 0x2fd   : > { %1961 = shalt.err (!%p1958_p8)
}
 0x2fe   : > { %s2019_s24 = smov 128   ;;  %s2020_s15 = smov 8  }
 0x2ff   : > { %1681 = dma.vmem_to_hbm [thread:$0]  (%p2227_p1), %s2675_s10, 1024, %s2680_s17, %s1290_s20, %s2019_s24, %s2019_s24, %s2020_s15  }
 0x300 PF: > { %s1318_s1 = sand.u32 1, %s1996_s27   ;;  %p2754_p3 = scmp.ne.s32.totalorder %s2739_s12, 0 }
 0x301   : > { %p2755_p7 = scmp.ge.s32.totalorder %s2008_s30, 2  ;;  %s1319_s9 = scalar_lea.sflag [#allocation4], %s1318_s1 }
 0x303   : > { %p1701_p10 = pnand %p2755_p7, %p2754_p3 }
 0x305   : > { %1991 = dma.done.wait (!%p1701_p10), %s1319_s9, 1024  }
 0x306   : > { %1993 = vsyncadd (!%p1701_p10), %s1319_s9, 4294966272  ;;  %p23_p13 = scmp.ge.s32.totalorder %s2217_s26, 4   ;;  %s2756_s27 = smov %s2000_s28 }
 0x307   : > { %s2757_s28 = smov %s2004_s29  ;;  %s2758_s29 = smov %s2233_s25 }
 0x308   : > { %s2759_s30 = smov %s2217_s26  ;;  %25 = sbr.rel (!%p23_p13) target bundleno = 10 (0xa), region = 113 }
 0x30f   :  { %1324 = vsyncpa [#allocation3], 1 }
 0x310   :  { %1326 = vsyncpa [#allocation3 + $0x1], 1 }
 0x311   :  { %1327 = vsyncpa [#allocation6], 1 }
 0x312   :  { %1328 = vsyncpa [#allocation9], 1 }
 0x313   :  { %1329 = vsyncpa [#allocation4], 1 }
 0x314   :  { %1331 = vsyncpa [#allocation4 + $0x1], 1 }

</bundles_post_ra>
